<compile_context>
chip_gen: v5e
topology: v5e:2x2
jax: 0.10.0
libtpu: 0.0.40
codegen_flags: <defaults>
</compile_context>

<pallas_src>
import functools
import math

import jax
import jax.numpy as jnp
from jax.experimental import pallas as pl
from jax.experimental.pallas import tpu as pltpu

PAD_TOKEN_ID = 19266
# Scoped-VMEM budget: safe for v7x (64 MiB physical); v5e/v6e (128 MiB) have headroom.
_VMEM_LIMIT_BYTES = 32 * 1024 * 1024


# ---------------------------------------------------------------------------
# tile pickers (respect the (8, 128) block constraints, fall back to full dim)
# ---------------------------------------------------------------------------

def _pick_sublane_tile(dim, preferred):
    """Tile for a second-to-last block dim: multiple of 8 dividing dim, or full dim."""
    for t in (preferred, 512, 256, 128, 64, 32, 16, 8):
        if t <= dim and dim % t == 0:
            return t
    # TODO(synk): pad instead of falling back to the full dim for large odd sizes.
    return dim


def _pick_lane_tile(dim, preferred):
    """Tile for a last (lane) block dim: multiple of 128 dividing dim, or full dim."""
    for t in (preferred, 1024, 512, 256, 128):
        if t <= dim and dim % t == 0:
            return t
    return dim


# ---------------------------------------------------------------------------
# Fused QKV projection: full-K single-pass GEMM (no K grid axis / accumulator)
# ---------------------------------------------------------------------------

def _qkv_proj_kernel(x_ref, w_ref, b_ref, o_ref):
    o_ref[...] = (jnp.dot(x_ref[...], w_ref[...],
                          preferred_element_type=jnp.float32)
                  + b_ref[...].astype(jnp.float32)).astype(o_ref.dtype)


def qkv_projection(x2d, w_qkv, b_qkv):
    """x2d: (M, K); w_qkv: (K, N); b_qkv: (1, N)  ->  (M, N)."""
    M, K = x2d.shape
    N = w_qkv.shape[1]
    tm = _pick_sublane_tile(M, 512)
    tn = _pick_lane_tile(N, 512)
    grid = (M // tm, N // tn)
    return pl.pallas_call(
        _qkv_proj_kernel,
        out_shape=jax.ShapeDtypeStruct((M, N), x2d.dtype),
        grid_spec=pltpu.PrefetchScalarGridSpec(
            num_scalar_prefetch=0,
            grid=grid,
            in_specs=[
                pl.BlockSpec((tm, K), lambda i, j: (i, 0)),
                pl.BlockSpec((K, tn), lambda i, j: (0, j)),
                pl.BlockSpec((1, tn), lambda i, j: (0, j)),
            ],
            out_specs=pl.BlockSpec((tm, tn), lambda i, j: (i, j)),
        ),
        compiler_params=pltpu.CompilerParams(
            dimension_semantics=("parallel", "parallel"),
            vmem_limit_bytes=_VMEM_LIMIT_BYTES,
        ),
    )(x2d, w_qkv, b_qkv)


# ---------------------------------------------------------------------------
# Flash attention: online softmax, per-head inner loop, grid = (B, q tiles, kv tiles)
# Inputs are (B, S, H, D) -- no HBM transposes; scale already folded into q.
# ---------------------------------------------------------------------------

def _flash_attn_kernel(q_ref, k_ref, v_ref, o_ref, q_sc, ml_sc, acc_sc):
    ki = pl.program_id(2)
    tq, num_heads, head_dim = q_ref.shape

    @pl.when(ki == 0)
    def _():
        # Cache q head-major ONCE per q tile (scale is pre-folded into the Q weights),
        # so no per-kv-step q work remains.
        for h in range(num_heads):
            q_sc[h] = q_ref[:, h, :]
        acc_sc[...] = jnp.zeros_like(acc_sc)
        ml_sc[...] = jnp.concatenate(
            [jnp.full((num_heads, tq, 1), -jnp.inf, jnp.float32),
             jnp.zeros((num_heads, tq, 1), jnp.float32)], axis=-1)

    # Per-head online softmax: live f32 temporaries are (tq, tk), not (H, tq, tk).
    for h in range(num_heads):
        k_h = k_ref[:, h, :]                                       # (tk, D) bf16
        v_h = v_ref[:, h, :]                                       # (tk, D) bf16
        s = jax.lax.dot_general(q_sc[h], k_h, (((1,), (1,)), ((), ())),
                                preferred_element_type=jnp.float32)  # (tq, tk) f32
        ml = ml_sc[h]                                              # (tq, 2) f32
        m_prev = ml[:, 0:1]
        l_prev = ml[:, 1:2]
        m_new = jnp.maximum(m_prev, jnp.max(s, axis=-1, keepdims=True))
        alpha = jnp.exp(m_prev - m_new)                            # (tq, 1)
        p = jnp.exp(s - m_new)                                     # (tq, tk) f32
        l_new = alpha * l_prev + jnp.sum(p, axis=-1, keepdims=True)
        acc_sc[h] = alpha * acc_sc[h] + jax.lax.dot_general(
            p.astype(v_h.dtype), v_h, (((1,), (0,)), ((), ())),
            preferred_element_type=jnp.float32)                    # (tq, D) f32
        ml_sc[h] = jnp.concatenate([m_new, l_new], axis=-1)

    @pl.when(ki == pl.num_programs(2) - 1)
    def _():
        inv_l = pl.reciprocal(ml_sc[:, :, 1:2], approx=True)       # (H, tq, 1), EUP slot
        out = acc_sc[...] * inv_l                                  # (H, tq, D) f32
        # Single transpose+reshape -> lane-dense (tq, H*D) slab, one wide store.
        o_ref[...] = (jnp.swapaxes(out, 0, 1)
                      .reshape(tq, num_heads * head_dim)
                      .astype(o_ref.dtype))


def flash_attention(q, k, v, *, block_q=None, block_k=None):
    """q, k, v: (B, S, H, D)  ->  (B, S, H*D). Scale must already be folded into q."""
    B, S, H, D = q.shape
    # v7x-safe defaults (32 MiB scoped VMEM); v5e/v6e can raise these together with
    # the VMEM limit to re-stream K/V less often at long S.
    tq = block_q if block_q is not None else _pick_sublane_tile(S, 128)
    tk = block_k if block_k is not None else _pick_sublane_tile(S, 256)
    assert S % tq == 0 and S % tk == 0, (S, tq, tk)
    # NOTE(megacore): keep (B, qi) parallel; for B=1 make sure S//tq >= 2 so both
    # v7x TensorCores get work.
    grid = (B, S // tq, S // tk)
    return pl.pallas_call(
        _flash_attn_kernel,
        out_shape=jax.ShapeDtypeStruct((B, S, H * D), q.dtype),
        grid_spec=pltpu.PrefetchScalarGridSpec(
            num_scalar_prefetch=0,
            grid=grid,
            in_specs=[
                pl.BlockSpec((None, tq, H, D), lambda b, qi, ki: (b, qi, 0, 0)),
                pl.BlockSpec((None, tk, H, D), lambda b, qi, ki: (b, ki, 0, 0)),
                pl.BlockSpec((None, tk, H, D), lambda b, qi, ki: (b, ki, 0, 0)),
            ],
            out_specs=pl.BlockSpec((None, tq, H * D), lambda b, qi, ki: (b, qi, 0)),
            scratch_shapes=[
                pltpu.VMEM((H, tq, D), q.dtype),       # head-major cached q (per q tile)
                pltpu.VMEM((H, tq, 2), jnp.float32),   # merged running max / denom
                pltpu.VMEM((H, tq, D), jnp.float32),   # running numerator
            ],
        ),
        compiler_params=pltpu.CompilerParams(
            dimension_semantics=("parallel", "parallel", "arbitrary"),
            vmem_limit_bytes=_VMEM_LIMIT_BYTES,
        ),
    )(q, k, v)


# ---------------------------------------------------------------------------
# RoPE glue (elementwise / gather; matches apply_rotary_pos_emb_index_torch)
# ---------------------------------------------------------------------------

def _rotate_half(x):
    x1, x2 = jnp.split(x, 2, axis=-1)
    return jnp.concatenate([-x2, x1], axis=-1)


def megatron_rotary_tables(table_len, dim, base=10000.0):
    # MegatronRotaryEmbedding(dim=head_dim//2, base=10000, precision=bfloat16)
    inv_freq = 1.0 / (base ** (jnp.arange(0, dim, 2, dtype=jnp.float32) / dim))
    t = jnp.arange(table_len, dtype=jnp.float32)
    freqs = jnp.einsum("i,j->ij", t, inv_freq)
    emb = jnp.concatenate([freqs, freqs], axis=-1)               # (table_len, dim)
    return jnp.cos(emb).astype(jnp.bfloat16), jnp.sin(emb).astype(jnp.bfloat16)


def _apply_rope(x, c, s):
    # x: (B, S, H, rot); c/s: (B, S, 1, rot)
    return x * c + _rotate_half(x) * s


def apply_2d_rotary(q, k, position_ids, rope_max_positions):
    """q, k: (B, S, H, D); position_ids: (B, 2, S) int32."""
    D = q.shape[-1]
    rot = D // 2
    cos, sin = megatron_rotary_tables(rope_max_positions, rot)

    pos = position_ids[:, 0, :]
    blk = position_ids[:, 1, :]
    pos_mask = pos == PAD_TOKEN_ID
    blk_mask = blk == PAD_TOKEN_ID
    # Matches torch: pad positions overwritten with the tensor max (then zeroed below).
    pos = jnp.where(pos_mask, jnp.max(pos), pos)
    blk = jnp.where(blk_mask, jnp.max(blk), blk)
    # Static-size rotary table (no host sync / recompile); the clamp only affects pad
    # rows, whose rotary output is zeroed afterwards anyway.
    pos = jnp.minimum(pos, rope_max_positions - 1)
    blk = jnp.minimum(blk, rope_max_positions - 1)

    cp = cos[pos][:, :, None, :].astype(q.dtype)
    sp = sin[pos][:, :, None, :].astype(q.dtype)
    cb = cos[blk][:, :, None, :].astype(q.dtype)
    sb = sin[blk][:, :, None, :].astype(q.dtype)

    q1, q2 = jnp.split(q, 2, axis=-1)
    k1, k2 = jnp.split(k, 2, axis=-1)
    q1 = _apply_rope(q1, cp, sp)
    k1 = _apply_rope(k1, cp, sp)
    q2 = _apply_rope(q2, cb, sb)
    k2 = _apply_rope(k2, cb, sb)

    zp = pos_mask[:, :, None, None]
    zb = blk_mask[:, :, None, None]
    q1 = jnp.where(zp, 0.0, q1)
    k1 = jnp.where(zp, 0.0, k1)
    q2 = jnp.where(zb, 0.0, q2)
    k2 = jnp.where(zb, 0.0, k2)

    return jnp.concatenate([q1, q2], axis=-1), jnp.concatenate([k1, k2], axis=-1)


# ---------------------------------------------------------------------------
# Parameter preparation (offline, once) and forward pass
# ---------------------------------------------------------------------------

def prepare_params(wq, bq, wk, bk, wv, bv, head_dim, dtype=jnp.bfloat16):
    """Fuse Q/K/V weights once and fold the attention scale into the Q projection.

    RoPE (rotation) and the pad-row zeroing are linear in q, so scaling q at the
    projection is exactly equivalent to flash-attn's softmax_scale = 1/sqrt(head_dim).
    """
    scale = 1.0 / math.sqrt(head_dim)
    w_qkv = jnp.concatenate([wq * scale, wk, wv], axis=1).astype(dtype)         # (K, 3K)
    b_qkv = jnp.concatenate([bq * scale, bk, bv], axis=0)[None, :].astype(dtype)  # (1, 3K)
    return {"w_qkv": w_qkv, "b_qkv": b_qkv}


def bert_self_flash_attention(hidden_states, position_ids, params, *, num_heads,
                              rope_max_positions=64, flash_block_q=None,
                              flash_block_k=None):
    """position_ids is what the module receives as `rotary_pos_emb`: int (bsz, 2, sq)."""
    bsz, q_len, hidden = hidden_states.shape
    head_dim = hidden // num_heads

    # --- fused Q/K/V projection (scale pre-folded into Q) ---
    x2d = hidden_states.reshape(bsz * q_len, hidden)
    qkv = qkv_projection(x2d, params["w_qkv"], params["b_qkv"])   # (M, 3*hidden)
    q, k, v = jnp.split(qkv, 3, axis=-1)
    q = q.reshape(bsz, q_len, num_heads, head_dim)
    k = k.reshape(bsz, q_len, num_heads, head_dim)
    v = v.reshape(bsz, q_len, num_heads, head_dim)

    # --- 2D rotary position embedding, stays in (B, S, H, D) ---
    q, k = apply_2d_rotary(q, k, position_ids, rope_max_positions)

    # --- attention: flash kernel consumes (B, S, H, D) directly (no HBM transposes) ---
    return flash_attention(q, k, v, block_q=flash_block_q, block_k=flash_block_k)


# ---------------------------------------------------------------------------
# Plain-JAX reference of the same forward (explicit scale, dense softmax)
# ---------------------------------------------------------------------------

def reference_forward(hidden_states, position_ids, wq, bq, wk, bk, wv, bv, *,
                      num_heads, rope_max_positions=64):
    bsz, q_len, hidden = hidden_states.shape
    head_dim = hidden // num_heads
    scale = 1.0 / math.sqrt(head_dim)
    x2d = hidden_states.reshape(bsz * q_len, hidden)

    def lin(w, b):
        y = jnp.dot(x2d, w.astype(x2d.dtype), preferred_element_type=jnp.float32)
        return (y + b.astype(jnp.float32)).astype(x2d.dtype)

    q = lin(wq, bq).reshape(bsz, q_len, num_heads, head_dim)
    k = lin(wk, bk).reshape(bsz, q_len, num_heads, head_dim)
    v = lin(wv, bv).reshape(bsz, q_len, num_heads, head_dim)
    q, k = apply_2d_rotary(q, k, position_ids, rope_max_positions)

    qh = jnp.transpose(q, (0, 2, 1, 3)).astype(jnp.float32) * scale
    kh = jnp.transpose(k, (0, 2, 1, 3)).astype(jnp.float32)
    vh = jnp.transpose(v, (0, 2, 1, 3)).astype(jnp.float32)
    s = jnp.einsum("bhqd,bhkd->bhqk", qh, kh)
    p = jax.nn.softmax(s, axis=-1)
    o = jnp.einsum("bhqk,bhkd->bhqd", p, vh)
    return (jnp.transpose(o, (0, 2, 1, 3))
            .reshape(bsz, q_len, num_heads * head_dim).astype(hidden_states.dtype))


# ---------------------------------------------------------------------------
# main
# ---------------------------------------------------------------------------

if __name__ == "__main__":
    bsz, seq, hidden, num_heads = 2, 16, 32, 4
    head_dim = hidden // num_heads
    dtype = jnp.bfloat16

    key = jax.random.PRNGKey(0)
    k_x, k_q, k_k, k_v = jax.random.split(key, 4)
    hidden_states = jax.random.normal(k_x, (bsz, seq, hidden),
                                      dtype=jnp.float32).astype(dtype)

    def init_linear(k, fan_in, fan_out):
        # torch nn.Linear default init, stored transposed as (in, out) for x @ W
        bound = 1.0 / math.sqrt(fan_in)
        kw, kb = jax.random.split(k)
        w = jax.random.uniform(kw, (fan_in, fan_out), minval=-bound, maxval=bound,
                               dtype=jnp.float32)
        b = jax.random.uniform(kb, (fan_out,), minval=-bound, maxval=bound,
                               dtype=jnp.float32)
        return w, b

    wq, bq = init_linear(k_q, hidden, hidden)
    wk, bk = init_linear(k_k, hidden, hidden)
    wv, bv = init_linear(k_v, hidden, hidden)
    params = prepare_params(wq, bq, wk, bk, wv, bv, head_dim, dtype)

    # `rotary_pos_emb` argument of the module = integer position ids, shape (bsz, 2, sq):
    # row 0 = positions, row 1 = block positions (GLM-style 2D rotary).
    pos_row = jnp.broadcast_to(jnp.arange(seq, dtype=jnp.int32), (bsz, seq))
    blk_row = jnp.broadcast_to(jnp.arange(seq, dtype=jnp.int32), (bsz, seq))
    position_ids = jnp.stack([pos_row, blk_row], axis=1)        # (bsz, 2, sq)

    fwd = jax.jit(bert_self_flash_attention,
                  static_argnames=("num_heads", "rope_max_positions",
                                   "flash_block_q", "flash_block_k"))
    # block_q/block_k = 8 -> (2, 2, 2) grid so multi-q-tile and multi-kv-step
    # online-softmax accumulation is exercised even at this tiny size.
    out = fwd(hidden_states, position_ids, params, num_heads=num_heads,
              rope_max_positions=64, flash_block_q=8, flash_block_k=8)
    out = jax.block_until_ready(out)

    ref_fn = jax.jit(reference_forward,
                     static_argnames=("num_heads", "rope_max_positions"))
    ref = ref_fn(hidden_states, position_ids, wq, bq, wk, bk, wv, bv,
                 num_heads=num_heads, rope_max_positions=64)
    ref = jax.block_until_ready(ref)

    assert out.shape == (bsz, seq, hidden)
    assert jnp.allclose(out.astype(jnp.float32), ref.astype(jnp.float32),
                        rtol=2e-2, atol=2e-2), "mismatch vs reference"

    print("KERNEL_OK")
</pallas_src>

<mosaic_0001>
module attributes {stable_mosaic.version = 11 : i64} {
  func.func @_qkv_proj_kernel(%arg0: i32, %arg1: i32, %arg2: memref<32x32xbf16, #tpu.memory_space<vmem>>, %arg3: memref<32x96xbf16, #tpu.memory_space<vmem>>, %arg4: memref<1x96xbf16, #tpu.memory_space<vmem>>, %arg5: memref<32x96xbf16, #tpu.memory_space<vmem>>) attributes {dimension_semantics = [#tpu.dimension_semantics<parallel>, #tpu.dimension_semantics<parallel>], iteration_bounds = array<i64: 1, 1>, scalar_prefetch = 0 : i64, scratch_operands = 0 : i64, tpu.core_type = #tpu.core_type<tc>, window_params = [{transform_indices = @transform_0, window_bounds = array<i64: 32, 32>}, {transform_indices = @transform_1, window_bounds = array<i64: 32, 96>}, {transform_indices = @transform_2, window_bounds = array<i64: 1, 96>}, {transform_indices = @transform_3, window_bounds = array<i64: 32, 96>}]} {
    %c0 = arith.constant 0 : index
    %c0_0 = arith.constant 0 : index
    %0 = vector.load %arg2[%c0, %c0_0] : memref<32x32xbf16, #tpu.memory_space<vmem>>, vector<32x32xbf16>
    %c0_1 = arith.constant 0 : index
    %c0_2 = arith.constant 0 : index
    %1 = vector.load %arg3[%c0_1, %c0_2] : memref<32x96xbf16, #tpu.memory_space<vmem>>, vector<32x96xbf16>
    %cst = arith.constant dense<0.000000e+00> : vector<32x96xf32>
    %2 = tpu.matmul %0, %1, %cst {dimension_numbers = #tpu.dot_dimension_numbers<[1], [0], [0], [1], [0, 0, 1, 1], [], []>} : vector<32x32xbf16>, vector<32x96xbf16>, vector<32x96xf32> -> vector<32x96xf32>
    %c0_3 = arith.constant 0 : index
    %c0_4 = arith.constant 0 : index
    %3 = vector.load %arg4[%c0_3, %c0_4] : memref<1x96xbf16, #tpu.memory_space<vmem>>, vector<1x96xbf16>
    %4 = arith.extf %3 : vector<1x96xbf16> to vector<1x96xf32>
    %5 = vector.broadcast %4 : vector<1x96xf32> to vector<32x96xf32>
    %6 = arith.addf %2, %5 : vector<32x96xf32>
    %7 = arith.truncf %6 : vector<32x96xf32> to vector<32x96xbf16>
    %c0_5 = arith.constant 0 : index
    %c0_6 = arith.constant 0 : index
    %8 = vector.load %arg5[%c0_5, %c0_6] : memref<32x96xbf16, #tpu.memory_space<vmem>>, vector<32x96xbf16>
    tpu.vector_store %arg5[%c0_5, %c0_6], %7 {strides = array<i32>} : memref<32x96xbf16, #tpu.memory_space<vmem>>, vector<32x96xbf16>,
    return
  }
  func.func @transform_0(%arg0: i32, %arg1: i32) -> (i32, i32) {
    %c0_i32 = arith.constant 0 : i32
    %c0_i32_0 = arith.constant 0 : i32
    return %arg0, %c0_i32 : i32, i32
  }
  func.func @transform_1(%arg0: i32, %arg1: i32) -> (i32, i32) {
    %c0_i32 = arith.constant 0 : i32
    %c0_i32_0 = arith.constant 0 : i32
    return %c0_i32, %arg1 : i32, i32
  }
  func.func @transform_2(%arg0: i32, %arg1: i32) -> (i32, i32) {
    %c0_i32 = arith.constant 0 : i32
    %c0_i32_0 = arith.constant 0 : i32
    return %c0_i32, %arg1 : i32, i32
  }
  func.func @transform_3(%arg0: i32, %arg1: i32) -> (i32, i32) {
    %c0_i32 = arith.constant 0 : i32
    return %arg0, %arg1 : i32, i32
  }
}

module attributes {stable_mosaic.version = 11 : i64} {
  func.func @_flash_attn_kernel(%arg0: i32, %arg1: i32, %arg2: i32, %arg3: memref<1x8x4x8xbf16, #tpu.memory_space<vmem>>, %arg4: memref<1x8x4x8xbf16, #tpu.memory_space<vmem>>, %arg5: memref<1x8x4x8xbf16, #tpu.memory_space<vmem>>, %arg6: memref<1x8x32xbf16, #tpu.memory_space<vmem>>, %arg7: memref<4x8x8xbf16, #tpu.memory_space<vmem>>, %arg8: memref<4x8x2xf32, #tpu.memory_space<vmem>>, %arg9: memref<4x8x8xf32, #tpu.memory_space<vmem>>) attributes {dimension_semantics = [#tpu.dimension_semantics<parallel>, #tpu.dimension_semantics<parallel>, #tpu.dimension_semantics<arbitrary>], iteration_bounds = array<i64: 2, 2, 2>, scalar_prefetch = 0 : i64, scratch_operands = 3 : i64, tpu.core_type = #tpu.core_type<tc>, window_params = [{transform_indices = @transform_0, window_bounds = array<i64: 1, 8, 4, 8>}, {transform_indices = @transform_1, window_bounds = array<i64: 1, 8, 4, 8>}, {transform_indices = @transform_2, window_bounds = array<i64: 1, 8, 4, 8>}, {transform_indices = @transform_3, window_bounds = array<i64: 1, 8, 32>}]} {
    %c0_i32 = arith.constant 0 : i32
    %0 = arith.cmpi eq, %arg2, %c0_i32 : i32
    %1 = arith.extui %0 : i1 to i32
    %c0_i32_0 = arith.constant 0 : i32
    %2 = arith.cmpi ne, %1, %c0_i32_0 : i32
    scf.if %2 {
      %c0_105 = arith.constant 0 : index
      %c0_106 = arith.constant 0 : index
      %c0_107 = arith.constant 0 : index
      %c0_108 = arith.constant 0 : index
      %154 = vector.load %arg3[%c0_105, %c0_106, %c0_107, %c0_108] : memref<1x8x4x8xbf16, #tpu.memory_space<vmem>>, vector<1x8x1x8xbf16>
      %155 = vector.shape_cast %154 : vector<1x8x1x8xbf16> to vector<8x8xbf16>
      %c0_109 = arith.constant 0 : index
      %c0_110 = arith.constant 0 : index
      %c0_111 = arith.constant 0 : index
      %156 = vector.load %arg7[%c0_109, %c0_110, %c0_111] : memref<4x8x8xbf16, #tpu.memory_space<vmem>>, vector<1x8x8xbf16>
      %157 = vector.shape_cast %156 : vector<1x8x8xbf16> to vector<8x8xbf16>
      %158 = vector.shape_cast %155 : vector<8x8xbf16> to vector<1x8x8xbf16>
      tpu.vector_store %arg7[%c0_109, %c0_110, %c0_111], %158 {strides = array<i32>} : memref<4x8x8xbf16, #tpu.memory_space<vmem>>, vector<1x8x8xbf16>,
      %c0_112 = arith.constant 0 : index
      %c0_113 = arith.constant 0 : index
      %c1_114 = arith.constant 1 : index
      %c0_115 = arith.constant 0 : index
      %159 = vector.load %arg3[%c0_112, %c0_113, %c1_114, %c0_115] : memref<1x8x4x8xbf16, #tpu.memory_space<vmem>>, vector<1x8x1x8xbf16>
      %160 = vector.shape_cast %159 : vector<1x8x1x8xbf16> to vector<8x8xbf16>
      %c1_116 = arith.constant 1 : index
      %c0_117 = arith.constant 0 : index
      %c0_118 = arith.constant 0 : index
      %161 = vector.load %arg7[%c1_116, %c0_117, %c0_118] : memref<4x8x8xbf16, #tpu.memory_space<vmem>>, vector<1x8x8xbf16>
      %162 = vector.shape_cast %161 : vector<1x8x8xbf16> to vector<8x8xbf16>
      %163 = vector.shape_cast %160 : vector<8x8xbf16> to vector<1x8x8xbf16>
      tpu.vector_store %arg7[%c1_116, %c0_117, %c0_118], %163 {strides = array<i32>} : memref<4x8x8xbf16, #tpu.memory_space<vmem>>, vector<1x8x8xbf16>,
      %c0_119 = arith.constant 0 : index
      %c0_120 = arith.constant 0 : index
      %c2_121 = arith.constant 2 : index
      %c0_122 = arith.constant 0 : index
      %164 = vector.load %arg3[%c0_119, %c0_120, %c2_121, %c0_122] : memref<1x8x4x8xbf16, #tpu.memory_space<vmem>>, vector<1x8x1x8xbf16>
      %165 = vector.shape_cast %164 : vector<1x8x1x8xbf16> to vector<8x8xbf16>
      %c2_123 = arith.constant 2 : index
      %c0_124 = arith.constant 0 : index
      %c0_125 = arith.constant 0 : index
      %166 = vector.load %arg7[%c2_123, %c0_124, %c0_125] : memref<4x8x8xbf16, #tpu.memory_space<vmem>>, vector<1x8x8xbf16>
      %167 = vector.shape_cast %166 : vector<1x8x8xbf16> to vector<8x8xbf16>
      %168 = vector.shape_cast %165 : vector<8x8xbf16> to vector<1x8x8xbf16>
      tpu.vector_store %arg7[%c2_123, %c0_124, %c0_125], %168 {strides = array<i32>} : memref<4x8x8xbf16, #tpu.memory_space<vmem>>, vector<1x8x8xbf16>,
      %c0_126 = arith.constant 0 : index
      %c0_127 = arith.constant 0 : index
      %c3_128 = arith.constant 3 : index
      %c0_129 = arith.constant 0 : index
      %169 = vector.load %arg3[%c0_126, %c0_127, %c3_128, %c0_129] : memref<1x8x4x8xbf16, #tpu.memory_space<vmem>>, vector<1x8x1x8xbf16>
      %170 = vector.shape_cast %169 : vector<1x8x1x8xbf16> to vector<8x8xbf16>
      %c3_130 = arith.constant 3 : index
      %c0_131 = arith.constant 0 : index
      %c0_132 = arith.constant 0 : index
      %171 = vector.load %arg7[%c3_130, %c0_131, %c0_132] : memref<4x8x8xbf16, #tpu.memory_space<vmem>>, vector<1x8x8xbf16>
      %172 = vector.shape_cast %171 : vector<1x8x8xbf16> to vector<8x8xbf16>
      %173 = vector.shape_cast %170 : vector<8x8xbf16> to vector<1x8x8xbf16>
      tpu.vector_store %arg7[%c3_130, %c0_131, %c0_132], %173 {strides = array<i32>} : memref<4x8x8xbf16, #tpu.memory_space<vmem>>, vector<1x8x8xbf16>,
      %cst_133 = arith.constant 0.000000e+00 : f32
      %174 = vector.broadcast %cst_133 : f32 to vector<4x8x8xf32>
      %c0_134 = arith.constant 0 : index
      %c0_135 = arith.constant 0 : index
      %c0_136 = arith.constant 0 : index
      %175 = vector.load %arg9[%c0_134, %c0_135, %c0_136] : memref<4x8x8xf32, #tpu.memory_space<vmem>>, vector<4x8x8xf32>
      tpu.vector_store %arg9[%c0_134, %c0_135, %c0_136], %174 {strides = array<i32>} : memref<4x8x8xf32, #tpu.memory_space<vmem>>, vector<4x8x8xf32>,
      %cst_137 = arith.constant 0xFF800000 : f32
      %176 = vector.broadcast %cst_137 : f32 to vector<4x8x1xf32>
      %cst_138 = arith.constant 0.000000e+00 : f32
      %177 = vector.broadcast %cst_138 : f32 to vector<4x8x1xf32>
      %178 = tpu.concatenate %176, %177 in 2 : vector<4x8x1xf32>, vector<4x8x1xf32> -> vector<4x8x2xf32>
      %c0_139 = arith.constant 0 : index
      %c0_140 = arith.constant 0 : index
      %c0_141 = arith.constant 0 : index
      %179 = vector.load %arg8[%c0_139, %c0_140, %c0_141] : memref<4x8x2xf32, #tpu.memory_space<vmem>>, vector<4x8x2xf32>
      tpu.vector_store %arg8[%c0_139, %c0_140, %c0_141], %178 {strides = array<i32>} : memref<4x8x2xf32, #tpu.memory_space<vmem>>, vector<4x8x2xf32>,
    } else {
    }
    %c0 = arith.constant 0 : index
    %c0_1 = arith.constant 0 : index
    %c0_2 = arith.constant 0 : index
    %c0_3 = arith.constant 0 : index
    %3 = vector.load %arg4[%c0, %c0_1, %c0_2, %c0_3] : memref<1x8x4x8xbf16, #tpu.memory_space<vmem>>, vector<1x8x1x8xbf16>
    %4 = vector.shape_cast %3 : vector<1x8x1x8xbf16> to vector<8x8xbf16>
    %c0_4 = arith.constant 0 : index
    %c0_5 = arith.constant 0 : index
    %c0_6 = arith.constant 0 : index
    %c0_7 = arith.constant 0 : index
    %5 = vector.load %arg5[%c0_4, %c0_5, %c0_6, %c0_7] : memref<1x8x4x8xbf16, #tpu.memory_space<vmem>>, vector<1x8x1x8xbf16>
    %6 = vector.shape_cast %5 : vector<1x8x1x8xbf16> to vector<8x8xbf16>
    %c0_8 = arith.constant 0 : index
    %c0_9 = arith.constant 0 : index
    %c0_10 = arith.constant 0 : index
    %7 = vector.load %arg7[%c0_8, %c0_9, %c0_10] : memref<4x8x8xbf16, #tpu.memory_space<vmem>>, vector<1x8x8xbf16>
    %8 = vector.shape_cast %7 : vector<1x8x8xbf16> to vector<8x8xbf16>
    %cst = arith.constant dense<0.000000e+00> : vector<8x8xf32>
    %9 = tpu.matmul %8, %4, %cst {dimension_numbers = #tpu.dot_dimension_numbers<[1], [1], [0], [0], [0, 0, 1, 0], [], []>} : vector<8x8xbf16>, vector<8x8xbf16>, vector<8x8xf32> -> vector<8x8xf32>
    %c0_11 = arith.constant 0 : index
    %c0_12 = arith.constant 0 : index
    %c0_13 = arith.constant 0 : index
    %10 = vector.load %arg8[%c0_11, %c0_12, %c0_13] : memref<4x8x2xf32, #tpu.memory_space<vmem>>, vector<1x8x2xf32>
    %11 = vector.shape_cast %10 : vector<1x8x2xf32> to vector<8x2xf32>
    %12 = vector.extract_strided_slice %11 {offsets = [0, 0], sizes = [8, 1], strides = [1, 1]} : vector<8x2xf32> to vector<8x1xf32>
    %13 = vector.extract_strided_slice %11 {offsets = [0, 1], sizes = [8, 1], strides = [1, 1]} : vector<8x2xf32> to vector<8x1xf32>
    %cst_14 = arith.constant dense<0xFF800000> : vector<8xf32>
    %14 = vector.multi_reduction <maximumf>, %9, %cst_14 [1] : vector<8x8xf32> to vector<8xf32>
    %15 = vector.shape_cast %14 : vector<8xf32> to vector<8x1xf32>
    %16 = arith.maximumf %12, %15 : vector<8x1xf32>
    %17 = arith.subf %12, %16 : vector<8x1xf32>
    %18 = math.exp %17 : vector<8x1xf32>
    %19 = vector.broadcast %16 : vector<8x1xf32> to vector<8x8xf32>
    %20 = arith.subf %9, %19 : vector<8x8xf32>
    %21 = math.exp %20 : vector<8x8xf32>
    %22 = arith.mulf %18, %13 : vector<8x1xf32>
    %cst_15 = arith.constant dense<0.000000e+00> : vector<8xf32>
    %23 = vector.multi_reduction <add>, %21, %cst_15 [1] : vector<8x8xf32> to vector<8xf32>
    %24 = vector.shape_cast %23 : vector<8xf32> to vector<8x1xf32>
    %25 = arith.addf %22, %24 : vector<8x1xf32>
    %c0_16 = arith.constant 0 : index
    %c0_17 = arith.constant 0 : index
    %c0_18 = arith.constant 0 : index
    %26 = vector.load %arg9[%c0_16, %c0_17, %c0_18] : memref<4x8x8xf32, #tpu.memory_space<vmem>>, vector<1x8x8xf32>
    %27 = vector.shape_cast %26 : vector<1x8x8xf32> to vector<8x8xf32>
    %28 = vector.broadcast %18 : vector<8x1xf32> to vector<8x8xf32>
    %29 = arith.mulf %28, %27 : vector<8x8xf32>
    %30 = arith.truncf %21 : vector<8x8xf32> to vector<8x8xbf16>
    %cst_19 = arith.constant dense<0.000000e+00> : vector<8x8xf32>
    %31 = tpu.matmul %30, %6, %cst_19 {dimension_numbers = #tpu.dot_dimension_numbers<[1], [0], [0], [1], [0, 0, 1, 1], [], []>} : vector<8x8xbf16>, vector<8x8xbf16>, vector<8x8xf32> -> vector<8x8xf32>
    %32 = arith.addf %29, %31 : vector<8x8xf32>
    %c0_20 = arith.constant 0 : index
    %c0_21 = arith.constant 0 : index
    %c0_22 = arith.constant 0 : index
    %33 = vector.load %arg9[%c0_20, %c0_21, %c0_22] : memref<4x8x8xf32, #tpu.memory_space<vmem>>, vector<1x8x8xf32>
    %34 = vector.shape_cast %33 : vector<1x8x8xf32> to vector<8x8xf32>
    %35 = vector.shape_cast %32 : vector<8x8xf32> to vector<1x8x8xf32>
    tpu.vector_store %arg9[%c0_20, %c0_21, %c0_22], %35 {strides = array<i32>} : memref<4x8x8xf32, #tpu.memory_space<vmem>>, vector<1x8x8xf32>,
    %36 = tpu.concatenate %16, %25 in 1 : vector<8x1xf32>, vector<8x1xf32> -> vector<8x2xf32>
    %c0_23 = arith.constant 0 : index
    %c0_24 = arith.constant 0 : index
    %c0_25 = arith.constant 0 : index
    %37 = vector.load %arg8[%c0_23, %c0_24, %c0_25] : memref<4x8x2xf32, #tpu.memory_space<vmem>>, vector<1x8x2xf32>
    %38 = vector.shape_cast %37 : vector<1x8x2xf32> to vector<8x2xf32>
    %39 = vector.shape_cast %36 : vector<8x2xf32> to vector<1x8x2xf32>
    tpu.vector_store %arg8[%c0_23, %c0_24, %c0_25], %39 {strides = array<i32>} : memref<4x8x2xf32, #tpu.memory_space<vmem>>, vector<1x8x2xf32>,
    %c0_26 = arith.constant 0 : index
    %c0_27 = arith.constant 0 : index
    %c1 = arith.constant 1 : index
    %c0_28 = arith.constant 0 : index
    %40 = vector.load %arg4[%c0_26, %c0_27, %c1, %c0_28] : memref<1x8x4x8xbf16, #tpu.memory_space<vmem>>, vector<1x8x1x8xbf16>
    %41 = vector.shape_cast %40 : vector<1x8x1x8xbf16> to vector<8x8xbf16>
    %c0_29 = arith.constant 0 : index
    %c0_30 = arith.constant 0 : index
    %c1_31 = arith.constant 1 : index
    %c0_32 = arith.constant 0 : index
    %42 = vector.load %arg5[%c0_29, %c0_30, %c1_31, %c0_32] : memref<1x8x4x8xbf16, #tpu.memory_space<vmem>>, vector<1x8x1x8xbf16>
    %43 = vector.shape_cast %42 : vector<1x8x1x8xbf16> to vector<8x8xbf16>
    %c1_33 = arith.constant 1 : index
    %c0_34 = arith.constant 0 : index
    %c0_35 = arith.constant 0 : index
    %44 = vector.load %arg7[%c1_33, %c0_34, %c0_35] : memref<4x8x8xbf16, #tpu.memory_space<vmem>>, vector<1x8x8xbf16>
    %45 = vector.shape_cast %44 : vector<1x8x8xbf16> to vector<8x8xbf16>
    %cst_36 = arith.constant dense<0.000000e+00> : vector<8x8xf32>
    %46 = tpu.matmul %45, %41, %cst_36 {dimension_numbers = #tpu.dot_dimension_numbers<[1], [1], [0], [0], [0, 0, 1, 0], [], []>} : vector<8x8xbf16>, vector<8x8xbf16>, vector<8x8xf32> -> vector<8x8xf32>
    %c1_37 = arith.constant 1 : index
    %c0_38 = arith.constant 0 : index
    %c0_39 = arith.constant 0 : index
    %47 = vector.load %arg8[%c1_37, %c0_38, %c0_39] : memref<4x8x2xf32, #tpu.memory_space<vmem>>, vector<1x8x2xf32>
    %48 = vector.shape_cast %47 : vector<1x8x2xf32> to vector<8x2xf32>
    %49 = vector.extract_strided_slice %48 {offsets = [0, 0], sizes = [8, 1], strides = [1, 1]} : vector<8x2xf32> to vector<8x1xf32>
    %50 = vector.extract_strided_slice %48 {offsets = [0, 1], sizes = [8, 1], strides = [1, 1]} : vector<8x2xf32> to vector<8x1xf32>
    %cst_40 = arith.constant dense<0xFF800000> : vector<8xf32>
    %51 = vector.multi_reduction <maximumf>, %46, %cst_40 [1] : vector<8x8xf32> to vector<8xf32>
    %52 = vector.shape_cast %51 : vector<8xf32> to vector<8x1xf32>
    %53 = arith.maximumf %49, %52 : vector<8x1xf32>
    %54 = arith.subf %49, %53 : vector<8x1xf32>
    %55 = math.exp %54 : vector<8x1xf32>
    %56 = vector.broadcast %53 : vector<8x1xf32> to vector<8x8xf32>
    %57 = arith.subf %46, %56 : vector<8x8xf32>
    %58 = math.exp %57 : vector<8x8xf32>
    %59 = arith.mulf %55, %50 : vector<8x1xf32>
    %cst_41 = arith.constant dense<0.000000e+00> : vector<8xf32>
    %60 = vector.multi_reduction <add>, %58, %cst_41 [1] : vector<8x8xf32> to vector<8xf32>
    %61 = vector.shape_cast %60 : vector<8xf32> to vector<8x1xf32>
    %62 = arith.addf %59, %61 : vector<8x1xf32>
    %c1_42 = arith.constant 1 : index
    %c0_43 = arith.constant 0 : index
    %c0_44 = arith.constant 0 : index
    %63 = vector.load %arg9[%c1_42, %c0_43, %c0_44] : memref<4x8x8xf32, #tpu.memory_space<vmem>>, vector<1x8x8xf32>
    %64 = vector.shape_cast %63 : vector<1x8x8xf32> to vector<8x8xf32>
    %65 = vector.broadcast %55 : vector<8x1xf32> to vector<8x8xf32>
    %66 = arith.mulf %65, %64 : vector<8x8xf32>
    %67 = arith.truncf %58 : vector<8x8xf32> to vector<8x8xbf16>
    %cst_45 = arith.constant dense<0.000000e+00> : vector<8x8xf32>
    %68 = tpu.matmul %67, %43, %cst_45 {dimension_numbers = #tpu.dot_dimension_numbers<[1], [0], [0], [1], [0, 0, 1, 1], [], []>} : vector<8x8xbf16>, vector<8x8xbf16>, vector<8x8xf32> -> vector<8x8xf32>
    %69 = arith.addf %66, %68 : vector<8x8xf32>
    %c1_46 = arith.constant 1 : index
    %c0_47 = arith.constant 0 : index
    %c0_48 = arith.constant 0 : index
    %70 = vector.load %arg9[%c1_46, %c0_47, %c0_48] : memref<4x8x8xf32, #tpu.memory_space<vmem>>, vector<1x8x8xf32>
    %71 = vector.shape_cast %70 : vector<1x8x8xf32> to vector<8x8xf32>
    %72 = vector.shape_cast %69 : vector<8x8xf32> to vector<1x8x8xf32>
    tpu.vector_store %arg9[%c1_46, %c0_47, %c0_48], %72 {strides = array<i32>} : memref<4x8x8xf32, #tpu.memory_space<vmem>>, vector<1x8x8xf32>,
    %73 = tpu.concatenate %53, %62 in 1 : vector<8x1xf32>, vector<8x1xf32> -> vector<8x2xf32>
    %c1_49 = arith.constant 1 : index
    %c0_50 = arith.constant 0 : index
    %c0_51 = arith.constant 0 : index
    %74 = vector.load %arg8[%c1_49, %c0_50, %c0_51] : memref<4x8x2xf32, #tpu.memory_space<vmem>>, vector<1x8x2xf32>
    %75 = vector.shape_cast %74 : vector<1x8x2xf32> to vector<8x2xf32>
    %76 = vector.shape_cast %73 : vector<8x2xf32> to vector<1x8x2xf32>
    tpu.vector_store %arg8[%c1_49, %c0_50, %c0_51], %76 {strides = array<i32>} : memref<4x8x2xf32, #tpu.memory_space<vmem>>, vector<1x8x2xf32>,
    %c0_52 = arith.constant 0 : index
    %c0_53 = arith.constant 0 : index
    %c2 = arith.constant 2 : index
    %c0_54 = arith.constant 0 : index
    %77 = vector.load %arg4[%c0_52, %c0_53, %c2, %c0_54] : memref<1x8x4x8xbf16, #tpu.memory_space<vmem>>, vector<1x8x1x8xbf16>
    %78 = vector.shape_cast %77 : vector<1x8x1x8xbf16> to vector<8x8xbf16>
    %c0_55 = arith.constant 0 : index
    %c0_56 = arith.constant 0 : index
    %c2_57 = arith.constant 2 : index
    %c0_58 = arith.constant 0 : index
    %79 = vector.load %arg5[%c0_55, %c0_56, %c2_57, %c0_58] : memref<1x8x4x8xbf16, #tpu.memory_space<vmem>>, vector<1x8x1x8xbf16>
    %80 = vector.shape_cast %79 : vector<1x8x1x8xbf16> to vector<8x8xbf16>
    %c2_59 = arith.constant 2 : index
    %c0_60 = arith.constant 0 : index
    %c0_61 = arith.constant 0 : index
    %81 = vector.load %arg7[%c2_59, %c0_60, %c0_61] : memref<4x8x8xbf16, #tpu.memory_space<vmem>>, vector<1x8x8xbf16>
    %82 = vector.shape_cast %81 : vector<1x8x8xbf16> to vector<8x8xbf16>
    %cst_62 = arith.constant dense<0.000000e+00> : vector<8x8xf32>
    %83 = tpu.matmul %82, %78, %cst_62 {dimension_numbers = #tpu.dot_dimension_numbers<[1], [1], [0], [0], [0, 0, 1, 0], [], []>} : vector<8x8xbf16>, vector<8x8xbf16>, vector<8x8xf32> -> vector<8x8xf32>
    %c2_63 = arith.constant 2 : index
    %c0_64 = arith.constant 0 : index
    %c0_65 = arith.constant 0 : index
    %84 = vector.load %arg8[%c2_63, %c0_64, %c0_65] : memref<4x8x2xf32, #tpu.memory_space<vmem>>, vector<1x8x2xf32>
    %85 = vector.shape_cast %84 : vector<1x8x2xf32> to vector<8x2xf32>
    %86 = vector.extract_strided_slice %85 {offsets = [0, 0], sizes = [8, 1], strides = [1, 1]} : vector<8x2xf32> to vector<8x1xf32>
    %87 = vector.extract_strided_slice %85 {offsets = [0, 1], sizes = [8, 1], strides = [1, 1]} : vector<8x2xf32> to vector<8x1xf32>
    %cst_66 = arith.constant dense<0xFF800000> : vector<8xf32>
    %88 = vector.multi_reduction <maximumf>, %83, %cst_66 [1] : vector<8x8xf32> to vector<8xf32>
    %89 = vector.shape_cast %88 : vector<8xf32> to vector<8x1xf32>
    %90 = arith.maximumf %86, %89 : vector<8x1xf32>
    %91 = arith.subf %86, %90 : vector<8x1xf32>
    %92 = math.exp %91 : vector<8x1xf32>
    %93 = vector.broadcast %90 : vector<8x1xf32> to vector<8x8xf32>
    %94 = arith.subf %83, %93 : vector<8x8xf32>
    %95 = math.exp %94 : vector<8x8xf32>
    %96 = arith.mulf %92, %87 : vector<8x1xf32>
    %cst_67 = arith.constant dense<0.000000e+00> : vector<8xf32>
    %97 = vector.multi_reduction <add>, %95, %cst_67 [1] : vector<8x8xf32> to vector<8xf32>
    %98 = vector.shape_cast %97 : vector<8xf32> to vector<8x1xf32>
    %99 = arith.addf %96, %98 : vector<8x1xf32>
    %c2_68 = arith.constant 2 : index
    %c0_69 = arith.constant 0 : index
    %c0_70 = arith.constant 0 : index
    %100 = vector.load %arg9[%c2_68, %c0_69, %c0_70] : memref<4x8x8xf32, #tpu.memory_space<vmem>>, vector<1x8x8xf32>
    %101 = vector.shape_cast %100 : vector<1x8x8xf32> to vector<8x8xf32>
    %102 = vector.broadcast %92 : vector<8x1xf32> to vector<8x8xf32>
    %103 = arith.mulf %102, %101 : vector<8x8xf32>
    %104 = arith.truncf %95 : vector<8x8xf32> to vector<8x8xbf16>
    %cst_71 = arith.constant dense<0.000000e+00> : vector<8x8xf32>
    %105 = tpu.matmul %104, %80, %cst_71 {dimension_numbers = #tpu.dot_dimension_numbers<[1], [0], [0], [1], [0, 0, 1, 1], [], []>} : vector<8x8xbf16>, vector<8x8xbf16>, vector<8x8xf32> -> vector<8x8xf32>
    %106 = arith.addf %103, %105 : vector<8x8xf32>
    %c2_72 = arith.constant 2 : index
    %c0_73 = arith.constant 0 : index
    %c0_74 = arith.constant 0 : index
    %107 = vector.load %arg9[%c2_72, %c0_73, %c0_74] : memref<4x8x8xf32, #tpu.memory_space<vmem>>, vector<1x8x8xf32>
    %108 = vector.shape_cast %107 : vector<1x8x8xf32> to vector<8x8xf32>
    %109 = vector.shape_cast %106 : vector<8x8xf32> to vector<1x8x8xf32>
    tpu.vector_store %arg9[%c2_72, %c0_73, %c0_74], %109 {strides = array<i32>} : memref<4x8x8xf32, #tpu.memory_space<vmem>>, vector<1x8x8xf32>,
    %110 = tpu.concatenate %90, %99 in 1 : vector<8x1xf32>, vector<8x1xf32> -> vector<8x2xf32>
    %c2_75 = arith.constant 2 : index
    %c0_76 = arith.constant 0 : index
    %c0_77 = arith.constant 0 : index
    %111 = vector.load %arg8[%c2_75, %c0_76, %c0_77] : memref<4x8x2xf32, #tpu.memory_space<vmem>>, vector<1x8x2xf32>
    %112 = vector.shape_cast %111 : vector<1x8x2xf32> to vector<8x2xf32>
    %113 = vector.shape_cast %110 : vector<8x2xf32> to vector<1x8x2xf32>
    tpu.vector_store %arg8[%c2_75, %c0_76, %c0_77], %113 {strides = array<i32>} : memref<4x8x2xf32, #tpu.memory_space<vmem>>, vector<1x8x2xf32>,
    %c0_78 = arith.constant 0 : index
    %c0_79 = arith.constant 0 : index
    %c3 = arith.constant 3 : index
    %c0_80 = arith.constant 0 : index
    %114 = vector.load %arg4[%c0_78, %c0_79, %c3, %c0_80] : memref<1x8x4x8xbf16, #tpu.memory_space<vmem>>, vector<1x8x1x8xbf16>
    %115 = vector.shape_cast %114 : vector<1x8x1x8xbf16> to vector<8x8xbf16>
    %c0_81 = arith.constant 0 : index
    %c0_82 = arith.constant 0 : index
    %c3_83 = arith.constant 3 : index
    %c0_84 = arith.constant 0 : index
    %116 = vector.load %arg5[%c0_81, %c0_82, %c3_83, %c0_84] : memref<1x8x4x8xbf16, #tpu.memory_space<vmem>>, vector<1x8x1x8xbf16>
    %117 = vector.shape_cast %116 : vector<1x8x1x8xbf16> to vector<8x8xbf16>
    %c3_85 = arith.constant 3 : index
    %c0_86 = arith.constant 0 : index
    %c0_87 = arith.constant 0 : index
    %118 = vector.load %arg7[%c3_85, %c0_86, %c0_87] : memref<4x8x8xbf16, #tpu.memory_space<vmem>>, vector<1x8x8xbf16>
    %119 = vector.shape_cast %118 : vector<1x8x8xbf16> to vector<8x8xbf16>
    %cst_88 = arith.constant dense<0.000000e+00> : vector<8x8xf32>
    %120 = tpu.matmul %119, %115, %cst_88 {dimension_numbers = #tpu.dot_dimension_numbers<[1], [1], [0], [0], [0, 0, 1, 0], [], []>} : vector<8x8xbf16>, vector<8x8xbf16>, vector<8x8xf32> -> vector<8x8xf32>
    %c3_89 = arith.constant 3 : index
    %c0_90 = arith.constant 0 : index
    %c0_91 = arith.constant 0 : index
    %121 = vector.load %arg8[%c3_89, %c0_90, %c0_91] : memref<4x8x2xf32, #tpu.memory_space<vmem>>, vector<1x8x2xf32>
    %122 = vector.shape_cast %121 : vector<1x8x2xf32> to vector<8x2xf32>
    %123 = vector.extract_strided_slice %122 {offsets = [0, 0], sizes = [8, 1], strides = [1, 1]} : vector<8x2xf32> to vector<8x1xf32>
    %124 = vector.extract_strided_slice %122 {offsets = [0, 1], sizes = [8, 1], strides = [1, 1]} : vector<8x2xf32> to vector<8x1xf32>
    %cst_92 = arith.constant dense<0xFF800000> : vector<8xf32>
    %125 = vector.multi_reduction <maximumf>, %120, %cst_92 [1] : vector<8x8xf32> to vector<8xf32>
    %126 = vector.shape_cast %125 : vector<8xf32> to vector<8x1xf32>
    %127 = arith.maximumf %123, %126 : vector<8x1xf32>
    %128 = arith.subf %123, %127 : vector<8x1xf32>
    %129 = math.exp %128 : vector<8x1xf32>
    %130 = vector.broadcast %127 : vector<8x1xf32> to vector<8x8xf32>
    %131 = arith.subf %120, %130 : vector<8x8xf32>
    %132 = math.exp %131 : vector<8x8xf32>
    %133 = arith.mulf %129, %124 : vector<8x1xf32>
    %cst_93 = arith.constant dense<0.000000e+00> : vector<8xf32>
    %134 = vector.multi_reduction <add>, %132, %cst_93 [1] : vector<8x8xf32> to vector<8xf32>
    %135 = vector.shape_cast %134 : vector<8xf32> to vector<8x1xf32>
    %136 = arith.addf %133, %135 : vector<8x1xf32>
    %c3_94 = arith.constant 3 : index
    %c0_95 = arith.constant 0 : index
    %c0_96 = arith.constant 0 : index
    %137 = vector.load %arg9[%c3_94, %c0_95, %c0_96] : memref<4x8x8xf32, #tpu.memory_space<vmem>>, vector<1x8x8xf32>
    %138 = vector.shape_cast %137 : vector<1x8x8xf32> to vector<8x8xf32>
    %139 = vector.broadcast %129 : vector<8x1xf32> to vector<8x8xf32>
    %140 = arith.mulf %139, %138 : vector<8x8xf32>
    %141 = arith.truncf %132 : vector<8x8xf32> to vector<8x8xbf16>
    %cst_97 = arith.constant dense<0.000000e+00> : vector<8x8xf32>
    %142 = tpu.matmul %141, %117, %cst_97 {dimension_numbers = #tpu.dot_dimension_numbers<[1], [0], [0], [1], [0, 0, 1, 1], [], []>} : vector<8x8xbf16>, vector<8x8xbf16>, vector<8x8xf32> -> vector<8x8xf32>
    %143 = arith.addf %140, %142 : vector<8x8xf32>
    %c3_98 = arith.constant 3 : index
    %c0_99 = arith.constant 0 : index
    %c0_100 = arith.constant 0 : index
    %144 = vector.load %arg9[%c3_98, %c0_99, %c0_100] : memref<4x8x8xf32, #tpu.memory_space<vmem>>, vector<1x8x8xf32>
    %145 = vector.shape_cast %144 : vector<1x8x8xf32> to vector<8x8xf32>
    %146 = vector.shape_cast %143 : vector<8x8xf32> to vector<1x8x8xf32>
    tpu.vector_store %arg9[%c3_98, %c0_99, %c0_100], %146 {strides = array<i32>} : memref<4x8x8xf32, #tpu.memory_space<vmem>>, vector<1x8x8xf32>,
    %147 = tpu.concatenate %127, %136 in 1 : vector<8x1xf32>, vector<8x1xf32> -> vector<8x2xf32>
    %c3_101 = arith.constant 3 : index
    %c0_102 = arith.constant 0 : index
    %c0_103 = arith.constant 0 : index
    %148 = vector.load %arg8[%c3_101, %c0_102, %c0_103] : memref<4x8x2xf32, #tpu.memory_space<vmem>>, vector<1x8x2xf32>
    %149 = vector.shape_cast %148 : vector<1x8x2xf32> to vector<8x2xf32>
    %150 = vector.shape_cast %147 : vector<8x2xf32> to vector<1x8x2xf32>
    tpu.vector_store %arg8[%c3_101, %c0_102, %c0_103], %150 {strides = array<i32>} : memref<4x8x2xf32, #tpu.memory_space<vmem>>, vector<1x8x2xf32>,
    %c1_i32 = arith.constant 1 : i32
    %151 = arith.cmpi eq, %arg2, %c1_i32 : i32
    %152 = arith.extui %151 : i1 to i32
    %c0_i32_104 = arith.constant 0 : i32
    %153 = arith.cmpi ne, %152, %c0_i32_104 : i32
    scf.if %153 {
      %c0_105 = arith.constant 0 : index
      %c0_106 = arith.constant 0 : index
      %c1_107 = arith.constant 1 : index
      %154 = vector.load %arg8[%c0_105, %c0_106, %c1_107] : memref<4x8x2xf32, #tpu.memory_space<vmem>>, vector<4x8x1xf32>
      %155 = tpu.reciprocal %154 {approx = true} : vector<4x8x1xf32> -> vector<4x8x1xf32>
      %c0_108 = arith.constant 0 : index
      %c0_109 = arith.constant 0 : index
      %c0_110 = arith.constant 0 : index
      %156 = vector.load %arg9[%c0_108, %c0_109, %c0_110] : memref<4x8x8xf32, #tpu.memory_space<vmem>>, vector<4x8x8xf32>
      %157 = vector.broadcast %155 : vector<4x8x1xf32> to vector<4x8x8xf32>
      %158 = arith.mulf %156, %157 : vector<4x8x8xf32>
      %159 = tpu.transpose %158, [1, 0, 2] : vector<4x8x8xf32> -> vector<8x4x8xf32>
      %160 = vector.shape_cast %159 : vector<8x4x8xf32> to vector<8x32xf32>
      %161 = arith.truncf %160 : vector<8x32xf32> to vector<8x32xbf16>
      %c0_111 = arith.constant 0 : index
      %c0_112 = arith.constant 0 : index
      %c0_113 = arith.constant 0 : index
      %162 = vector.load %arg6[%c0_111, %c0_112, %c0_113] : memref<1x8x32xbf16, #tpu.memory_space<vmem>>, vector<1x8x32xbf16>
      %163 = vector.shape_cast %162 : vector<1x8x32xbf16> to vector<8x32xbf16>
      %164 = vector.shape_cast %161 : vector<8x32xbf16> to vector<1x8x32xbf16>
      tpu.vector_store %arg6[%c0_111, %c0_112, %c0_113], %164 {strides = array<i32>} : memref<1x8x32xbf16, #tpu.memory_space<vmem>>, vector<1x8x32xbf16>,
    } else {
    }
    return
  }
  func.func @transform_0(%arg0: i32, %arg1: i32, %arg2: i32) -> (i32, i32, i32, i32) {
    %c0_i32 = arith.constant 0 : i32
    %c0_i32_0 = arith.constant 0 : i32
    %c0_i32_1 = arith.constant 0 : i32
    return %arg0, %arg1, %c0_i32, %c0_i32_0 : i32, i32, i32, i32
  }
  func.func @transform_1(%arg0: i32, %arg1: i32, %arg2: i32) -> (i32, i32, i32, i32) {
    %c0_i32 = arith.constant 0 : i32
    %c0_i32_0 = arith.constant 0 : i32
    %c0_i32_1 = arith.constant 0 : i32
    return %arg0, %arg2, %c0_i32, %c0_i32_0 : i32, i32, i32, i32
  }
  func.func @transform_2(%arg0: i32, %arg1: i32, %arg2: i32) -> (i32, i32, i32, i32) {
    %c0_i32 = arith.constant 0 : i32
    %c0_i32_0 = arith.constant 0 : i32
    %c0_i32_1 = arith.constant 0 : i32
    return %arg0, %arg2, %c0_i32, %c0_i32_0 : i32, i32, i32, i32
  }
  func.func @transform_3(%arg0: i32, %arg1: i32, %arg2: i32) -> (i32, i32, i32) {
    %c0_i32 = arith.constant 0 : i32
    %c0_i32_0 = arith.constant 0 : i32
    return %arg0, %arg1, %c0_i32 : i32, i32, i32
  }
}

</mosaic_0001>

<bundles_post_ra>
// kernel: bert_self_flash_attention.2
= control target key start
LH: loop header
LB: loop body
LE: loop exit
PB: predicated region body
PF: predicated region fallthrough
CT: control target
= control target key end

     0   :  { %vm48_vm0 = vcmask 261120   ;;  %vm78_vm1 = vcmask 781312   ;;  %s158_s1 = inlined_call_operand.vmem [shape: bf16[32,96], index: 1, kind: input, shape index: {}]   ;;  %s159_s0 = inlined_call_operand.vmem [shape: bf16[32,32], index: 0, kind: input, shape index: {}]   ;;  %s160_s2 = inlined_call_operand.vmem [shape: bf16[1,96], index: 2, kind: input, shape index: {}]   ;;  %s161_s3 = inlined_call_operand.vmem [shape: bf16[32,96], index: 3, kind: output, shape index: {}]  }
   0x1   :  { %v108_v0 = vld [vmem:[%s158_s1 + $0x8] sm:$0xff]  ;;  %v107_v1 = vld [vmem:[%s158_s1] sm:$0xff] }
   0x2   :  { %61 = vmatpush.bf16.msra.mxu0 %v108_v0  ;;  %109 = vmatpush.bf16.msra.mxu1 %v108_v0  ;;  %v105_v2 = vld [vmem:[%s159_s0] sm:$0xff]  ;;  %v106_v3 = vld [vmem:[%s159_s0 + $0x8] sm:$0xff] }
   0x3   :  { %v23_v4 = vld [vmem:[%s160_s2] sm:$0x1] }
   0x4   :  { %v24_v5 = vunpack.c.l.bf16 %v23_v4 }
   0x6   :  { %62 = vmatpush.bf16.msra.mxu0 %v107_v1  ;;  %110 = vmatpush.bf16.msra.mxu1 %v107_v1  ;;  %v25_v6 = vperm.slane %v24_v5, 0 }
   0x9   :  { %103 = vmatmul.msk.bf16.vlgmr.msra.gmra.mxu0 %vm48_vm0, %v105_v2  ;;  %104 = vmatmul.msk.bf16.vlgmr.msra.gmra.mxu1 %vm48_vm0, %v106_v3 }
  0x86   :  { %v64_v7 = vpop.f32.mrf.mxu0  ;;  %v69_v8 = vpop.f32.mrf.mxu1 }
  0x87   :  { %v65_v9 = vadd.f32 %v64_v7, %v25_v6  ;;  %v70_v10 = vadd.f32 %v69_v8, %v25_v6 }
  0x89   :  { %v74_v11 = vpack.c.bf16 %v65_v9, %v65_v9  ;;  %v76_v12 = vpack.c.bf16 %v70_v10, %v70_v10 }
  0x8b   :  { %79 = vst.msk [vmem:[%s161_s3] sm:$0xf] %vm78_vm1, %v74_v11 }
  0x8c   :  { %81 = vst.msk [vmem:[%s161_s3 + $0x8] sm:$0xf] %vm78_vm1, %v76_v12 }
  0x8e   :  { %v66_v13 = vpop.f32.mrf.mxu0  ;;  %v71_v14 = vpop.f32.mrf.mxu1 }
  0x8f   :  { %v67_v15 = vadd.f32 %v66_v13, %v25_v6  ;;  %v72_v16 = vadd.f32 %v71_v14, %v25_v6 }
  0x91   :  { %v75_v17 = vpack.c.bf16 %v67_v15, %v67_v15  ;;  %v77_v18 = vpack.c.bf16 %v72_v16, %v72_v16 }
  0x93   :  { %80 = vst.msk [vmem:[%s161_s3 + $0x4] sm:$0xf] %vm78_vm1, %v75_v17 }
  0x94   :  { %82 = vst.msk [vmem:[%s161_s3 + $0xc] sm:$0xf] %vm78_vm1, %v77_v18 }

// kernel: bert_self_flash_attention.3
= control target key start
LH: loop header
LB: loop body
LE: loop exit
PB: predicated region body
PF: predicated region fallthrough
CT: control target
= control target key end

     0   :  { %8 = vsyncpa [#allocation6], 0  ;;  %s2641_s0 = inlined_call_operand.vmem [shape: bf16[2,16,4,8], index: 0, kind: input, shape index: {}]   ;;  %s2642_s1 = inlined_call_operand.vmem [shape: bf16[2,16,4,8], index: 1, kind: input, shape index: {}]   ;;  %s2643_s2 = inlined_call_operand.vmem [shape: bf16[2,16,4,8], index: 2, kind: input, shape index: {}]   ;;  %s2644_s3 = inlined_call_operand.hbm [shape: bf16[2,16,32], index: 3, kind: output, shape index: {}]  }
   0x1   :  { %10 = vsyncpa [#allocation6 + $0x1], 0  ;;  %s2037_s12 = smov 0   ;;  %s2039_s13 = smov 0  }
   0x2   :  { %s2041_s14 = smov 0   ;;  %s2043_s15 = smov 0  }
   0x3   :  { %s2045_s16 = smov 0   ;;  %s2047_s17 = smov 0  }
   0x4   :  { %s2049_s18 = smov 0   ;;  %s2051_s19 = smov 0  }
   0x5   :  { %s2053_s20 = smov 0   ;;  %s2055_s21 = smov 0  }
   0x6 LB: > { %2651 = sst [smem:[#allocation8_spill]] %s1993_s18  ;;  %s1739_s22 = sadd.s32 4294967295, %s2005_s21   ;;  %s2005_s21 = sphi %s2055_s21, %s16_s21   ;;  %s2001_s20 = sphi %s2053_s20, %s2665_s20   ;;  %s1997_s19 = sphi %s2051_s19, %s2664_s19   ;;  %s1993_s18 = sphi %s2049_s18, %s2663_s18   ;;  %s1989_s17 = sphi %s2047_s17, %s2662_s17   ;;  %s1985_s16 = sphi %s2045_s16, %s2661_s16   ;;  %s1981_s15 = sphi %s2043_s15, %s2660_s15   ;;  %s1977_s14 = sphi %s2041_s14, %s2668_s14   ;;  %s1973_s13 = sphi %s2039_s13, %s2667_s13   ;;  %s1969_s12 = sphi %s2037_s12, %s2666_s12  }
   0x7   : > { %2652 = sst [smem:[#allocation9_spill]] %s1997_s19  ;;  %s1740_s23 = sadd.s32 4294967294, %s2005_s21  }
   0x8   : > { %2653 = sst [smem:[#allocation10_spill]] %s2001_s20  ;;  %s28_s24 = sadd.s32 1, %s1993_s18 }
   0x9   : > { %p29_p0 = scmp.ge.s32.totalorder %s28_s24, 2  ;;  %s31_s25 = sadd.s32 1, %s1997_s19 }
   0xa   : > { %s35_s26 = sadd.s32 1, %s2001_s20  ;;  %p138_p1 = scmp.ne.s32.totalorder %s1977_s14, %s1973_s13 }
   0xb   : > { %s2670_s24 = smov (%p29_p0, %s28_s24), 0  ;;  %s2672_s25 = smov (!%p29_p0, %s31_s25), %s1997_s19 }
   0xc   : > { %2654 = sst [smem:[#allocation11_spill]] %s2670_s24  ;;  %p139_p2 = scmp.eq.s32.totalorder %s1739_s22, 7 }
   0xd   : > { %p144_p3 = scmp.ne.s32.totalorder %s1973_s13, %s1969_s12  ;;  %p33_p4 = scmp.ge.s32.totalorder %s2672_s25, 2 }
   0xe   : > { %p145_p5 = scmp.eq.s32.totalorder %s1740_s23, 7  ;;  %p2099_p6 = por %p139_p2, %p138_p1 }
   0xf   : > { %s2674_s25 = smov (%p33_p4, %s2672_s25), 0  ;;  %s2676_s26 = smov (!%p33_p4, %s35_s26), %s2001_s20 }
  0x10   : > { %2656 = sst [smem:[#allocation12_spill]] %s2674_s25  ;;  %p2106_p7 = por %p145_p5, %p144_p3 }
  0x11   : > { %p1743_p8 = scmp.ge.s32.totalorder %s2005_s21, 1  ;;  %p37_p9 = scmp.ge.s32.totalorder %s2676_s26, 2 }
  0x12   : > { %p202_p10 = scmp.lt.s32.totalorder %s2005_s21, 9  ;;  %s124_s29 = ssub.s32 %s1997_s19, %s2674_s25 }
  0x13   : > { %s2678_s26 = smov (%p37_p9, %s2676_s26), 0  ;;  %s128_s5 = sadd.s32 1, %s1977_s14 }
  0x14   : > { %2658 = sst [smem:[#allocation13_spill]] %s2678_s26  ;;  %p203_p11 = pnand %p1743_p8, %p202_p10 }
  0x15   : > { %s123_s30 = ssub.s32 %s2001_s20, %s2678_s26  ;;  %s2647_s7 = sand.u32 (!%p203_p11), 1, %s1973_s13  }
  0x16   : > { %s125_s4 = sor.u32 %s124_s29, %s123_s30  ;;  %206 = sbr.rel (%p203_p11) target bundleno = 1685 (0x695), region = 32 }
  0x17   : > { %p126_p12 = scmp.eq.s32.totalorder %s125_s4, 0  ;;  %s1745_s8 = sshll.u32 (!%p203_p11), %s1985_s16, 3 }
  0x18   : > { %s2126_s9 = sshll.u32 (!%p203_p11), %s2647_s7, 2  ;;  %p249_p13 = scmp.lt.s32.totalorder (!%p203_p11), %s1989_s17, 1 }
  0x19   : > { %s2120_s6 = scalar_select %p126_p12, %s1977_s14, %s128_s5  }
  0x1a   : > { %p251_p0 = scmp.lt.s32.totalorder (!%p203_p11), %s1745_s8, 15  ;;  %s1748_s22 = sshll.u32 (!%p203_p11), %s1981_s15, 3 }
  0x1b   : > { %s250_s10 = scalar_select %p249_p13, %s1989_s17, 1 }
  0x1c   : > { %s2680_s8 = smov (!%p251_p0, %s1745_s8), 15  ;;  %p261_p1 = scmp.lt.s32.totalorder %s1748_s22, 15 }
  0x1d   : > { %s1746_s11 = sshll.u32 %s250_s10, 4  ;;  %p1754_p2 = scmp.ne.s32.totalorder %s1981_s15, 0 }
  0x1e   : > { %s254_s23 = sadd.s32 %s1746_s11, %s2680_s8  ;;  %s2682_s22 = smov (!%p261_p1, %s1748_s22), 15 }
  0x1f   : > { %s1747_s29 = sshll.u32 %s254_s23, 1  ;;  %s264_s26 = sadd.s32 %s1746_s11, %s2682_s22 }
  0x20   : > { %s2134_s5 = scalar_lea.vmem %s2641_s0, %s1747_s29  ;;  %s1750_s25 = sshll.u32 %s264_s26, 1 }
  0x21   : > { %s2139_s20 = scalar_lea.vmem %s2642_s1, %s1750_s25  ;;  %s2144_s10 = scalar_lea.vmem %s2643_s2, %s1750_s25 }
  0x22   : > { %s247_s8 = scalar_lea.vmem [#allocation5], %s2126_s9  ;;  %282 = sbr.rel (%p1754_p2) target bundleno = 116 (0x74), region = 36 }
  0x27   : > { %v283_v0 = vld [vmem:[%s2134_s5] sm:$0x1]  ;;  %v284_v1 = vld [vmem:[%s2134_s5 + $0x2] sm:$0x1]  ;;  %v285_v2 = vld [vmem:[%s2134_s5 + $0x4] sm:$0x1] }
  0x28   : > { %292 = vst [vmem:[#allocation1] ss:$2 sm:$0xff] %v283_v0  ;;  %v286_v3 = vld [vmem:[%s2134_s5 + $0x6] sm:$0x1]  ;;  %v287_v4 = vld [vmem:[%s2134_s5 + $0x8] sm:$0x1] }
  0x29   : > { %297 = vst [vmem:[#allocation1 + $0x10] ss:$2 sm:$0xff] %v284_v1  ;;  %v288_v5 = vld [vmem:[%s2134_s5 + $0xa] sm:$0x1]  ;;  %v289_v6 = vld [vmem:[%s2134_s5 + $0xc] sm:$0x1] }
  0x2a   : > { %302 = vst [vmem:[#allocation1 + $0x20] ss:$2 sm:$0xff] %v285_v2  ;;  %v290_v8 = vld [vmem:[%s2134_s5 + $0xe] sm:$0x1]  ;;  %vm335_vm0 = vcmask 1041409   ;;  %vm338_vm1 = vcmask 1042434  }
  0x2b   : > { %307 = vst [vmem:[#allocation1 + $0x30] ss:$2 sm:$0xff] %v286_v3  ;;  %v359_v18 = vld [vmem:[%s2134_s5] sm:$0x1]  ;;  %v360_v20 = vld [vmem:[%s2134_s5 + $0x2] sm:$0x1] }
  0x2c   : > { %v361_v21 = vld [vmem:[%s2134_s5 + $0x4] sm:$0x1]  ;;  %v362_v22 = vld [vmem:[%s2134_s5 + $0x6] sm:$0x1]  ;;  %vm341_vm2 = vcmask 1043459   ;;  %vm344_vm3 = vcmask 1044484  }
  0x2d   : > { %vm347_vm4 = vcmask 1045509   ;;  %vm350_vm5 = vcmask 1046534   ;;  %vm353_vm6 = vcmask 1047559   ;;  %v363_v38 = vld [vmem:[%s2134_s5 + $0x8] sm:$0x1]  ;;  %vm357_vm7 = vcmask 60416  }
  0x2e   : > { %v364_v41 = vld [vmem:[%s2134_s5 + $0xa] sm:$0x1]  ;;  %v365_v42 = vld [vmem:[%s2134_s5 + $0xc] sm:$0x1]  ;;  %v366_v46 = vld [vmem:[%s2134_s5 + $0xe] sm:$0x1] }
  0x2f   : > { %v293_v7 = vld.sshfl [vmem:[#allocation1] sm:$0xff pattern:$0x75643120]  ;;  %vm566_vm8 = vcmask 64512   ;;  %vm571_vm9 = vcmask 7168   ;;  %vm573_vm10 = vcmask 15360  }
  0x30   : > { %311 = vst [vmem:[#allocation1] ss:$2 sm:$0xff] %v287_v4  ;;  %v298_v9 = vld.sshfl [vmem:[#allocation1 + $0x10] sm:$0xff pattern:$0x75643120]  ;;  %v326_v14 = vunpack.c.l.b16 %v293_v7 }
  0x31   : > { %315 = vst [vmem:[#allocation1 + $0x10] ss:$2 sm:$0xff] %v288_v5  ;;  %v303_v10 = vld.sshfl [vmem:[#allocation1 + $0x20] sm:$0xff pattern:$0x75643120]  ;;  %v327_v11 = vunpack.c.l.b16 %v298_v9 }
  0x32   : > { %319 = vst [vmem:[#allocation1 + $0x20] ss:$2 sm:$0xff] %v289_v6  ;;  %v308_v12 = vld.sshfl [vmem:[#allocation1 + $0x30] sm:$0xff pattern:$0x75643120]  ;;  %v328_v13 = vunpack.c.l.b16 %v303_v10 }
  0x33   : > { %323 = vst [vmem:[#allocation1 + $0x30] ss:$2 sm:$0xff] %v290_v8  ;;  %v329_v15 = vunpack.c.l.b16 %v308_v12  ;;  %v334_v16 = vrot.slane %v327_v11, 7  ;;  %v428_v57 = vld [vmem:[%s2134_s5] sm:$0x2] }
  0x34   : > { %v337_v17 = vrot.slane %v328_v13, 6  ;;  %v429_v59 = vld [vmem:[%s2134_s5 + $0x2] sm:$0x2]  ;;  %v430_v60 = vld [vmem:[%s2134_s5 + $0x4] sm:$0x2] }
  0x35   : > { %v336_v19 = vsel %vm335_vm0, %v334_v16, %v326_v14  ;;  %v340_v24 = vrot.slane %v329_v15, 5  ;;  %v431_v62 = vld [vmem:[%s2134_s5 + $0x6] sm:$0x2]  ;;  %v432_v13 = vld [vmem:[%s2134_s5 + $0x8] sm:$0x2] }
  0x36   : > { %v339_v27 = vsel %vm338_vm1, %v337_v17, %v336_v19  ;;  %v433_v15 = vld [vmem:[%s2134_s5 + $0xa] sm:$0x2]  ;;  %v434_v16 = vld [vmem:[%s2134_s5 + $0xc] sm:$0x2] }
  0x37   : > { %v312_v23 = vld.sshfl [vmem:[#allocation1] sm:$0xff pattern:$0x75643120]  ;;  %v342_v34 = vsel %vm341_vm2, %v340_v24, %v339_v27 }
  0x38   : > { %368 = vst [vmem:[#allocation1] ss:$2 sm:$0xff] %v359_v18  ;;  %v316_v25 = vld.sshfl [vmem:[#allocation1 + $0x10] sm:$0xff pattern:$0x75643120]  ;;  %v330_v26 = vunpack.c.l.b16 %v312_v23 }
  0x39   : > { %373 = vst [vmem:[#allocation1 + $0x10] ss:$2 sm:$0xff] %v360_v20  ;;  %v320_v28 = vld.sshfl [vmem:[#allocation1 + $0x20] sm:$0xff pattern:$0x75643120]  ;;  %v331_v29 = vunpack.c.l.b16 %v316_v25 }
  0x3a   : > { %378 = vst [vmem:[#allocation1 + $0x20] ss:$2 sm:$0xff] %v361_v21  ;;  %v324_v30 = vld.sshfl [vmem:[#allocation1 + $0x30] sm:$0xff pattern:$0x75643120]  ;;  %v332_v31 = vunpack.c.l.b16 %v320_v28  ;;  %v343_v32 = vrot.slane %v330_v26, 4 }
  0x3b   : > { %383 = vst [vmem:[#allocation1 + $0x30] ss:$2 sm:$0xff] %v362_v22  ;;  %v333_v33 = vunpack.c.l.b16 %v324_v30  ;;  %v346_v35 = vrot.slane %v331_v29, 3  ;;  %v435_v20 = vld [vmem:[%s2134_s5 + $0xe] sm:$0x2] }
  0x3c   : > { %v345_v36 = vsel %vm344_vm3, %v343_v32, %v342_v34  ;;  %v349_v37 = vrot.slane %v332_v31, 2  ;;  %v497_v32 = vld [vmem:[%s2134_s5] sm:$0x2]  ;;  %v2007_v34 = vmov 0.0  }
  0x3d   : > { %v348_v39 = vsel %vm347_vm4, %v346_v35, %v345_v36  ;;  %v352_v40 = vrot.slane %v333_v33, 1  ;;  %567 = vst.msk [vmem:[#allocation4] sm:$0xff] %vm566_vm8, %v2007_v34  ;;  %v498_v35 = vld [vmem:[%s2134_s5 + $0x2] sm:$0x2]  ;;  %v499_v36 = vld [vmem:[%s2134_s5 + $0x4] sm:$0x2] }
  0x3e   : > { %v351_v43 = vsel %vm350_vm5, %v349_v37, %v348_v39  ;;  %568 = vst.msk [vmem:[#allocation4 + $0x8] sm:$0xff] %vm566_vm8, %v2007_v34 }
  0x3f   : > { %v369_v44 = vld.sshfl [vmem:[#allocation1] sm:$0xff pattern:$0x75643120]  ;;  %v354_v45 = vsel %vm353_vm6, %v352_v40, %v351_v43  ;;  %569 = vst.msk [vmem:[#allocation4 + $0x10] sm:$0xff] %vm566_vm8, %v2007_v34 }
  0x40   : > { %387 = vst [vmem:[#allocation1] ss:$2 sm:$0xff] %v363_v38  ;;  %v402_v47 = vunpack.c.l.b16 %v369_v44  ;;  %v374_v48 = vld.sshfl [vmem:[#allocation1 + $0x10] sm:$0xff pattern:$0x75643120]  ;;  %v355_v49 = vpack.c.b16 %v354_v45, %v354_v45 }
  0x41   : > { %391 = vst [vmem:[#allocation1 + $0x10] ss:$2 sm:$0xff] %v364_v41  ;;  %v403_v50 = vunpack.c.l.b16 %v374_v48  ;;  %v379_v51 = vld.sshfl [vmem:[#allocation1 + $0x20] sm:$0xff pattern:$0x75643120] }
  0x42   : > { %v410_v52 = vrot.slane %v402_v47, 1  ;;  %395 = vst [vmem:[#allocation1 + $0x20] ss:$2 sm:$0xff] %v365_v42  ;;  %v404_v53 = vunpack.c.l.b16 %v379_v51  ;;  %v384_v54 = vld.sshfl [vmem:[#allocation1 + $0x30] sm:$0xff pattern:$0x75643120] }
  0x43   : > { %358 = vst.msk [vmem:[#allocation2] sm:$0xf] %vm357_vm7, %v355_v49  ;;  %v405_v55 = vunpack.c.l.b16 %v384_v54  ;;  %v500_v38 = vld [vmem:[%s2134_s5 + $0x6] sm:$0x2]  ;;  %v572_v47 = vsel %vm571_vm9, -inf, %v2007_v34 }
  0x44   : > { %399 = vst [vmem:[#allocation1 + $0x30] ss:$2 sm:$0xff] %v366_v46  ;;  %v412_v56 = vrot.slane %v404_v53, 7  ;;  %v411_v58 = vsel %vm335_vm0, %v403_v50, %v410_v52  ;;  %v501_v54 = vld [vmem:[%s2134_s5 + $0x8] sm:$0x2] }
  0x45   : > { %v414_v63 = vrot.slane %v405_v55, 6  ;;  %570 = vst.msk [vmem:[#allocation4 + $0x18] sm:$0xff] %vm566_vm8, %v2007_v34 }
  0x46   : > { %v413_v2 = vsel %vm338_vm1, %v412_v56, %v411_v58  ;;  %574 = vst.msk [vmem:[#allocation3] sm:$0xff] %vm573_vm10, %v572_v47  ;;  %v502_v56 = vld [vmem:[%s2134_s5 + $0xa] sm:$0x2] }
  0x47   : > { %v388_v61 = vld.sshfl [vmem:[#allocation1] sm:$0xff pattern:$0x75643120]  ;;  %v415_v8 = vsel %vm341_vm2, %v414_v63, %v413_v2  ;;  %575 = vst.msk [vmem:[#allocation3 + $0x8] sm:$0xff] %vm573_vm10, %v572_v47 }
  0x48   : > { %437 = vst [vmem:[#allocation1] ss:$2 sm:$0xff] %v428_v57  ;;  %v392_v0 = vld.sshfl [vmem:[#allocation1 + $0x10] sm:$0xff pattern:$0x75643120]  ;;  %v406_v1 = vunpack.c.l.b16 %v388_v61 }
  0x49   : > { %442 = vst [vmem:[#allocation1 + $0x10] ss:$2 sm:$0xff] %v429_v59  ;;  %v396_v3 = vld.sshfl [vmem:[#allocation1 + $0x20] sm:$0xff pattern:$0x75643120]  ;;  %v407_v4 = vunpack.c.l.b16 %v392_v0 }
  0x4a   : > { %447 = vst [vmem:[#allocation1 + $0x20] ss:$2 sm:$0xff] %v430_v60  ;;  %v408_v5 = vunpack.c.l.b16 %v396_v3  ;;  %v416_v6 = vrot.slane %v406_v1, 5  ;;  %v503_v59 = vld [vmem:[%s2134_s5 + $0xc] sm:$0x2] }
  0x4b   : > { %v400_v7 = vld.sshfl [vmem:[#allocation1 + $0x30] sm:$0xff pattern:$0x75643120]  ;;  %v418_v9 = vrot.slane %v407_v4, 4  ;;  %v504_v61 = vld [vmem:[%s2134_s5 + $0xe] sm:$0x2] }
  0x4c   : > { %452 = vst [vmem:[#allocation1 + $0x30] ss:$2 sm:$0xff] %v431_v62  ;;  %v409_v10 = vunpack.c.l.b16 %v400_v7  ;;  %v417_v11 = vsel %vm344_vm3, %v416_v6, %v415_v8  ;;  %v420_v12 = vrot.slane %v408_v5, 3 }
  0x4d   : > { %v419_v14 = vsel %vm347_vm4, %v418_v9, %v417_v11  ;;  %576 = vst.msk [vmem:[#allocation3 + $0x10] sm:$0xff] %vm573_vm10, %v572_v47 }
  0x4e   : > { %v421_v17 = vsel %vm350_vm5, %v420_v12, %v419_v14  ;;  %v422_v18 = vrot.slane %v409_v10, 2  ;;  %577 = vst.msk [vmem:[#allocation3 + $0x18] sm:$0xff] %vm573_vm10, %v572_v47 }
  0x4f   : > { %v438_v19 = vld.sshfl [vmem:[#allocation1] sm:$0xff pattern:$0x75643120] }
  0x50   : > { %456 = vst [vmem:[#allocation1] ss:$2 sm:$0xff] %v432_v13  ;;  %v471_v21 = vunpack.c.l.b16 %v438_v19  ;;  %v443_v22 = vld.sshfl [vmem:[#allocation1 + $0x10] sm:$0xff pattern:$0x75643120]  ;;  %v423_v23 = vsel %vm353_vm6, %v422_v18, %v421_v17 }
  0x51   : > { %460 = vst [vmem:[#allocation1 + $0x10] ss:$2 sm:$0xff] %v433_v15  ;;  %v472_v24 = vunpack.c.l.b16 %v443_v22  ;;  %v448_v25 = vld.sshfl [vmem:[#allocation1 + $0x20] sm:$0xff pattern:$0x75643120]  ;;  %v424_v26 = vpack.c.b16 %v423_v23, %v423_v23 }
  0x52   : > { %v479_v27 = vrot.slane %v471_v21, 2  ;;  %464 = vst [vmem:[#allocation1 + $0x20] ss:$2 sm:$0xff] %v434_v16  ;;  %v473_v30 = vunpack.c.l.b16 %v448_v25 }
  0x53   : > { %v480_v28 = vrot.slane %v472_v24, 1  ;;  %427 = vst.msk [vmem:[#allocation2 + $0x4] sm:$0xf] %vm357_vm7, %v424_v26  ;;  %v453_v29 = vld.sshfl [vmem:[#allocation1 + $0x30] sm:$0xff pattern:$0x75643120] }
  0x54   : > { %468 = vst [vmem:[#allocation1 + $0x30] ss:$2 sm:$0xff] %v435_v20  ;;  %v474_v31 = vunpack.c.l.b16 %v453_v29 }
  0x55   : > { %v481_v33 = vsel %vm335_vm0, %v480_v28, %v479_v27 }
  0x56   : > { %v483_v39 = vrot.slane %v474_v31, 7  ;;  %v482_v42 = vsel %vm338_vm1, %v473_v30, %v481_v33 }
  0x57   : > { %v457_v37 = vld.sshfl [vmem:[#allocation1] sm:$0xff pattern:$0x75643120] }
  0x58   : > { %506 = vst [vmem:[#allocation1] ss:$2 sm:$0xff] %v497_v32  ;;  %v461_v40 = vld.sshfl [vmem:[#allocation1 + $0x10] sm:$0xff pattern:$0x75643120]  ;;  %v475_v41 = vunpack.c.l.b16 %v457_v37  ;;  %v484_v49 = vsel %vm341_vm2, %v483_v39, %v482_v42 }
  0x59   : > { %511 = vst [vmem:[#allocation1 + $0x10] ss:$2 sm:$0xff] %v498_v35  ;;  %v465_v43 = vld.sshfl [vmem:[#allocation1 + $0x20] sm:$0xff pattern:$0x75643120]  ;;  %v476_v44 = vunpack.c.l.b16 %v461_v40 }
  0x5a   : > { %516 = vst [vmem:[#allocation1 + $0x20] ss:$2 sm:$0xff] %v499_v36  ;;  %v477_v45 = vunpack.c.l.b16 %v465_v43  ;;  %v485_v46 = vrot.slane %v475_v41, 6 }
  0x5b   : > { %v469_v48 = vld.sshfl [vmem:[#allocation1 + $0x30] sm:$0xff pattern:$0x75643120]  ;;  %v487_v50 = vrot.slane %v476_v44, 5 }
  0x5c   : > { %521 = vst [vmem:[#allocation1 + $0x30] ss:$2 sm:$0xff] %v500_v38  ;;  %v478_v51 = vunpack.c.l.b16 %v469_v48  ;;  %v486_v52 = vsel %vm344_vm3, %v485_v46, %v484_v49  ;;  %v489_v53 = vrot.slane %v477_v45, 4 }
  0x5d   : > { %v488_v55 = vsel %vm347_vm4, %v487_v50, %v486_v52 }
  0x5e   : > { %v490_v57 = vsel %vm350_vm5, %v489_v53, %v488_v55  ;;  %v491_v58 = vrot.slane %v478_v51, 3 }
  0x5f   : > { %v507_v60 = vld.sshfl [vmem:[#allocation1] sm:$0xff pattern:$0x75643120] }
  0x60   : > { %525 = vst [vmem:[#allocation1] ss:$2 sm:$0xff] %v501_v54  ;;  %v512_v62 = vld.sshfl [vmem:[#allocation1 + $0x10] sm:$0xff pattern:$0x75643120]  ;;  %v492_v63 = vsel %vm353_vm6, %v491_v58, %v490_v57  ;;  %v540_v0 = vunpack.c.l.b16 %v507_v60 }
  0x61   : > { %529 = vst [vmem:[#allocation1 + $0x10] ss:$2 sm:$0xff] %v502_v56  ;;  %v493_v1 = vpack.c.b16 %v492_v63, %v492_v63  ;;  %v517_v2 = vld.sshfl [vmem:[#allocation1 + $0x20] sm:$0xff pattern:$0x75643120]  ;;  %v541_v3 = vunpack.c.l.b16 %v512_v62 }
  0x62   : > { %533 = vst [vmem:[#allocation1 + $0x20] ss:$2 sm:$0xff] %v503_v59  ;;  %v542_v4 = vunpack.c.l.b16 %v517_v2  ;;  %v548_v5 = vrot.slane %v540_v0, 3 }
  0x63   : > { %496 = vst.msk [vmem:[#allocation2 + $0x8] sm:$0xf] %vm357_vm7, %v493_v1  ;;  %v522_v6 = vld.sshfl [vmem:[#allocation1 + $0x30] sm:$0xff pattern:$0x75643120]  ;;  %v549_v7 = vrot.slane %v541_v3, 2 }
  0x64   : > { %537 = vst [vmem:[#allocation1 + $0x30] ss:$2 sm:$0xff] %v504_v61  ;;  %v551_v8 = vrot.slane %v542_v4, 1  ;;  %v543_v11 = vunpack.c.l.b16 %v522_v6 }
  0x65   : > { %v550_v9 = vsel %vm335_vm0, %v549_v7, %v548_v5 }
  0x66   : > { %v552_v14 = vsel %vm338_vm1, %v551_v8, %v550_v9 }
  0x67   : > { %v526_v10 = vld.sshfl [vmem:[#allocation1] sm:$0xff pattern:$0x75643120]  ;;  %v553_v20 = vsel %vm341_vm2, %v543_v11, %v552_v14 }
  0x68   : > { %v530_v12 = vld.sshfl [vmem:[#allocation1 + $0x10] sm:$0xff pattern:$0x75643120]  ;;  %v544_v13 = vunpack.c.l.b16 %v526_v10 }
  0x69   : > { %v534_v15 = vld.sshfl [vmem:[#allocation1 + $0x20] sm:$0xff pattern:$0x75643120]  ;;  %v545_v16 = vunpack.c.l.b16 %v530_v12 }
  0x6a   : > { %v546_v17 = vunpack.c.l.b16 %v534_v15  ;;  %v554_v18 = vrot.slane %v544_v13, 7 }
  0x6b   : > { %v538_v19 = vld.sshfl [vmem:[#allocation1 + $0x30] sm:$0xff pattern:$0x75643120]  ;;  %v556_v21 = vrot.slane %v545_v16, 6 }
  0x6c   : > { %v547_v22 = vunpack.c.l.b16 %v538_v19  ;;  %v555_v23 = vsel %vm344_vm3, %v554_v18, %v553_v20  ;;  %v558_v24 = vrot.slane %v546_v17, 5 }
  0x6d   : > { %v557_v25 = vsel %vm347_vm4, %v556_v21, %v555_v23 }
  0x6e   : > { %v559_v26 = vsel %vm350_vm5, %v558_v24, %v557_v25  ;;  %v560_v27 = vrot.slane %v547_v22, 4 }
  0x70   : > { %v561_v28 = vsel %vm353_vm6, %v560_v27, %v559_v26 }
  0x71   : > { %v562_v29 = vpack.c.b16 %v561_v28, %v561_v28 }
  0x73   : > { %565 = vst.msk [vmem:[#allocation2 + $0xc] sm:$0xf] %vm357_vm7, %v562_v29 }
  0x74 PF: > { %v578_v30 = vld [vmem:[%s2139_s20] sm:$0x1]  ;;  %v579_v31 = vld [vmem:[%s2139_s20 + $0x2] sm:$0x1]  ;;  %v580_v32 = vld [vmem:[%s2139_s20 + $0x4] sm:$0x1] }
  0x75   : > { %596 = vst [vmem:[#allocation1] ss:$4 sm:$0xff] %v578_v30  ;;  %v581_v33 = vld [vmem:[%s2139_s20 + $0x6] sm:$0x1]  ;;  %v582_v36 = vld [vmem:[%s2139_s20 + $0x8] sm:$0x1] }
  0x76   : > { %601 = vst [vmem:[#allocation1 + $0x20] ss:$4 sm:$0xff] %v579_v31  ;;  %v583_v38 = vld [vmem:[%s2139_s20 + $0xa] sm:$0x1]  ;;  %vm637_vm11 = vcmask 1041409   ;;  %vm640_vm12 = vcmask 1042434  }
  0x77   : > { %v584_v46 = vld [vmem:[%s2139_s20 + $0xc] sm:$0x1]  ;;  %v585_v48 = vld [vmem:[%s2139_s20 + $0xe] sm:$0x1]  ;;  %vm643_vm13 = vcmask 1043459   ;;  %vm646_vm14 = vcmask 1044484  }
  0x78   : > { %v586_v57 = vld [vmem:[%s2144_s10] sm:$0x1]  ;;  %v587_v59 = vld [vmem:[%s2144_s10 + $0x2] sm:$0x1]  ;;  %vm649_vm15 = vcmask 1045509   ;;  %vm652_vm0 = vcmask 1046534  }
  0x79   : > { %vm655_vm1 = vcmask 1047559   ;;  %vm658_vm2 = vcmask 64512   ;;  %v588_v6 = vld [vmem:[%s2144_s10 + $0x4] sm:$0x1]  ;;  %v589_v8 = vld [vmem:[%s2144_s10 + $0x6] sm:$0x1] }
  0x7a   : > { %v594_v12 = vld [vmem:[#allocation2] sm:$0xf]  ;;  %v592_v17 = vld [vmem:[%s2144_s10 + $0xc] sm:$0x1]  ;;  %v593_v18 = vld [vmem:[%s2144_s10 + $0xe] sm:$0x1] }
  0x7b   : > { %v590_v13 = vld [vmem:[%s2144_s10 + $0x8] sm:$0x1]  ;;  %v591_v14 = vld [vmem:[%s2144_s10 + $0xa] sm:$0x1]  ;;  %v797_v21 = vld [vmem:[%s2139_s20] sm:$0x1] }
  0x7c   : > { %v597_v34 = vld.sshfl [vmem:[#allocation1] sm:$0xff pattern:$0x73625140]  ;;  %v801_v29 = vld [vmem:[%s2139_s20 + $0x8] sm:$0x1]  ;;  %s2009_s18 = smov 127  }
  0x7d   : > { %v602_v35 = vld.sshfl [vmem:[#allocation1 + $0x20] sm:$0xff pattern:$0x73625140]  ;;  %605 = vst [vmem:[#allocation1] ss:$4 sm:$0xff] %v580_v32  ;;  %v628_v42 = vunpack.c.l.b16 %v597_v34  ;;  %vm770_vm3 = vcmask 1043456  }
  0x7e   : > { %609 = vst [vmem:[#allocation1 + $0x20] ss:$4 sm:$0xff] %v581_v33  ;;  %v629_v37 = vunpack.c.l.b16 %v602_v35  ;;  %v798_v22 = vld [vmem:[%s2139_s20 + $0x2] sm:$0x1]  ;;  %v799_v25 = vld [vmem:[%s2139_s20 + $0x4] sm:$0x1] }
  0x7f   : > { %v800_v26 = vld [vmem:[%s2139_s20 + $0x6] sm:$0x1]  ;;  %v802_v31 = vld [vmem:[%s2139_s20 + $0xa] sm:$0x1]  ;;  %s2010_s19 = smov 1   ;;  %vm793_vm4 = vcmask 7168  }
  0x80   : > { %v636_v43 = vrot.slane %v629_v37, 7  ;;  %vm795_vm5 = vcmask 15360   ;;  %p1763_p3 = scmp.ne.s32.totalorder %s1981_s15, 1 }
  0x81   : > { %s2014_s15 = smov (!%p1763_p3), 24   ;;  %s2016_s24 = smov (!%p1763_p3), 16  }
  0x82   : > { %v638_v47 = vsel %vm637_vm11, %v636_v43, %v628_v42 }
  0x84   : > { %v606_v39 = vld.sshfl [vmem:[#allocation1] sm:$0xff pattern:$0x73625140] }
  0x85   : > { %v610_v40 = vld.sshfl [vmem:[#allocation1 + $0x20] sm:$0xff pattern:$0x73625140]  ;;  %613 = vst [vmem:[#allocation1] ss:$4 sm:$0xff] %v582_v36  ;;  %v630_v41 = vunpack.c.l.b16 %v606_v39 }
  0x86   : > { %617 = vst [vmem:[#allocation1 + $0x20] ss:$4 sm:$0xff] %v583_v38  ;;  %v631_v44 = vunpack.c.l.b16 %v610_v40  ;;  %v803_v39 = vld [vmem:[%s2139_s20 + $0xc] sm:$0x1] }
  0x87   : > { %v639_v45 = vrot.slane %v630_v41, 6  ;;  %v804_v41 = vld [vmem:[%s2139_s20 + $0xe] sm:$0x1] }
  0x88   : > { %v642_v50 = vrot.slane %v631_v44, 5 }
  0x89   : > { %v641_v53 = vsel %vm640_vm12, %v639_v45, %v638_v47 }
  0x8a   : > { %v644_v56 = vsel %vm643_vm13, %v642_v50, %v641_v53  ;;  %v805_v50 = vld [vmem:[%s2144_s10] sm:$0x1] }
  0x8c   : > { %v614_v49 = vld.sshfl [vmem:[#allocation1] sm:$0xff pattern:$0x73625140] }
  0x8d   : > { %v618_v51 = vld.sshfl [vmem:[#allocation1 + $0x20] sm:$0xff pattern:$0x73625140]  ;;  %621 = vst [vmem:[#allocation1] ss:$4 sm:$0xff] %v584_v46  ;;  %v632_v52 = vunpack.c.l.b16 %v614_v49 }
  0x8e   : > { %625 = vst [vmem:[#allocation1 + $0x20] ss:$4 sm:$0xff] %v585_v48  ;;  %v633_v54 = vunpack.c.l.b16 %v618_v51 }
  0x8f   : > { %v645_v55 = vrot.slane %v632_v52, 4  ;;  %v806_v52 = vld [vmem:[%s2144_s10 + $0x2] sm:$0x1] }
  0x90   : > { %v648_v58 = vrot.slane %v633_v54, 3 }
  0x91   : > { %v647_v60 = vsel %vm646_vm14, %v645_v55, %v644_v56 }
  0x92   : > { %v650_v1 = vsel %vm649_vm15, %v648_v58, %v647_v60 }
  0x94   : > { %v622_v61 = vld.sshfl [vmem:[#allocation1] sm:$0xff pattern:$0x73625140] }
  0x95   : > { %v626_v62 = vld.sshfl [vmem:[#allocation1 + $0x20] sm:$0xff pattern:$0x73625140]  ;;  %v634_v63 = vunpack.c.l.b16 %v622_v61  ;;  %712 = vst [vmem:[#allocation1] ss:$4 sm:$0xff] %v586_v57 }
  0x96   : > { %v635_v0 = vunpack.c.l.b16 %v626_v62  ;;  %717 = vst [vmem:[#allocation1 + $0x20] ss:$4 sm:$0xff] %v587_v59  ;;  %v807_v62 = vld [vmem:[%s2144_s10 + $0x4] sm:$0x1] }
  0x97   : > { %v651_v2 = vrot.slane %v634_v63, 2 }
  0x98   : > { %v654_v3 = vrot.slane %v635_v0, 1  ;;  %v808_v0 = vld [vmem:[%s2144_s10 + $0x6] sm:$0x1] }
  0x99   : > { %v653_v4 = vsel %vm652_vm0, %v651_v2, %v650_v1 }
  0x9a   : > { %v656_v5 = vsel %vm655_vm1, %v654_v3, %v653_v4 }
  0x9b   : > { %v657_v7 = vpack.c.b16 %v656_v5, %v656_v5  ;;  %v809_v5 = vld [vmem:[%s2144_s10 + $0x8] sm:$0x1] }
  0x9c   : > { %v2239_v9 = vld.sshfl [vmem:[#allocation1] sm:$0xff pattern:$0x73625140] }
  0x9d   : > { %v663_v10 = vsel %vm658_vm2, %v657_v7, 0  ;;  %v2242_v11 = vld.sshfl [vmem:[#allocation1 + $0x20] sm:$0xff pattern:$0x73625140]  ;;  %721 = vst [vmem:[#allocation1] ss:$4 sm:$0xff] %v588_v6 }
  0x9e   : > { %672 = vmatpush.bf16.xpose.msra.mxu0 %v663_v10  ;;  %725 = vst [vmem:[#allocation1 + $0x20] ss:$4 sm:$0xff] %v589_v8  ;;  %v814_v6 = vld [vmem:[#allocation2 + $0x4] sm:$0xf]  ;;  %v810_v7 = vld [vmem:[%s2144_s10 + $0xa] sm:$0x1] }
  0xa4   : > { %v2246_v15 = vld.sshfl [vmem:[#allocation1] sm:$0xff pattern:$0x73625140] }
  0xa5   : > { %1755 = vmatmul.msk.bf16.vlgmr.msra.gmra.mxu0 %vm658_vm2, %v594_v12  ;;  %v2249_v16 = vld.sshfl [vmem:[#allocation1 + $0x20] sm:$0xff pattern:$0x73625140]  ;;  %729 = vst [vmem:[#allocation1] ss:$4 sm:$0xff] %v590_v13 }
  0xa6   : > { %733 = vst [vmem:[#allocation1 + $0x20] ss:$4 sm:$0xff] %v591_v14  ;;  %v811_v12 = vld [vmem:[%s2144_s10 + $0xc] sm:$0x1]  ;;  %v812_v13 = vld [vmem:[%s2144_s10 + $0xe] sm:$0x1] }
  0xac   : > { %v2253_v19 = vld.sshfl [vmem:[#allocation1] sm:$0xff pattern:$0x73625140] }
  0xad   : > { %v2255_v20 = vld.sshfl [vmem:[#allocation1 + $0x20] sm:$0xff pattern:$0x73625140]  ;;  %737 = vst [vmem:[#allocation1] ss:$4 sm:$0xff] %v592_v17 }
  0xae   : > { %741 = vst [vmem:[#allocation1 + $0x20] ss:$4 sm:$0xff] %v593_v18  ;;  %v1008_v18 = vld [vmem:[%s2139_s20] sm:$0x2] }
  0xb4   : > { %v2259_v23 = vld.sshfl [vmem:[#allocation1] sm:$0xff pattern:$0x73625140] }
  0xb5   : > { %v2261_v24 = vld.sshfl [vmem:[#allocation1 + $0x20] sm:$0xff pattern:$0x73625140]  ;;  %816 = vst [vmem:[#allocation1] ss:$4 sm:$0xff] %v797_v21 }
  0xb6   : > { %821 = vst [vmem:[#allocation1 + $0x20] ss:$4 sm:$0xff] %v798_v22  ;;  %v1009_v21 = vld [vmem:[%s2139_s20 + $0x2] sm:$0x2] }
  0xbc   : > { %v817_v27 = vld.sshfl [vmem:[#allocation1] sm:$0xff pattern:$0x73625140] }
  0xbd   : > { %v822_v28 = vld.sshfl [vmem:[#allocation1 + $0x20] sm:$0xff pattern:$0x73625140]  ;;  %825 = vst [vmem:[#allocation1] ss:$4 sm:$0xff] %v799_v25  ;;  %v848_v30 = vunpack.c.l.b16 %v817_v27 }
  0xbe   : > { %829 = vst [vmem:[#allocation1 + $0x20] ss:$4 sm:$0xff] %v800_v26  ;;  %v849_v35 = vunpack.c.l.b16 %v822_v28  ;;  %v1010_v26 = vld [vmem:[%s2139_s20 + $0x4] sm:$0x2]  ;;  %v1011_v27 = vld [vmem:[%s2139_s20 + $0x6] sm:$0x2] }
  0xbf   : > { %v856_v36 = vrot.slane %v848_v30, 1  ;;  %v1012_v30 = vld [vmem:[%s2139_s20 + $0x8] sm:$0x2] }
  0xc1   : > { %v857_v40 = vsel %vm637_vm11, %v849_v35, %v856_v36  ;;  %v1015_v35 = vld [vmem:[%s2139_s20 + $0xe] sm:$0x2] }
  0xc4   : > { %v826_v32 = vld.sshfl [vmem:[#allocation1] sm:$0xff pattern:$0x73625140] }
  0xc5   : > { %v830_v33 = vld.sshfl [vmem:[#allocation1 + $0x20] sm:$0xff pattern:$0x73625140]  ;;  %833 = vst [vmem:[#allocation1] ss:$4 sm:$0xff] %v801_v29  ;;  %v850_v34 = vunpack.c.l.b16 %v826_v32 }
  0xc6   : > { %837 = vst [vmem:[#allocation1 + $0x20] ss:$4 sm:$0xff] %v802_v31  ;;  %v851_v37 = vunpack.c.l.b16 %v830_v33  ;;  %v1013_v31 = vld [vmem:[%s2139_s20 + $0xa] sm:$0x2] }
  0xc7   : > { %v858_v38 = vrot.slane %v850_v34, 7  ;;  %v1014_v34 = vld [vmem:[%s2139_s20 + $0xc] sm:$0x2] }
  0xc8   : > { %v860_v43 = vrot.slane %v851_v37, 6 }
  0xc9   : > { %v859_v46 = vsel %vm640_vm12, %v858_v38, %v857_v40  ;;  %v1016_v38 = vld [vmem:[%s2144_s10] sm:$0x2] }
  0xca   : > { %v861_v49 = vsel %vm643_vm13, %v860_v43, %v859_v46  ;;  %v1019_v43 = vld [vmem:[%s2144_s10 + $0x6] sm:$0x2] }
  0xcc   : > { %v834_v42 = vld.sshfl [vmem:[#allocation1] sm:$0xff pattern:$0x73625140] }
  0xcd   : > { %v838_v44 = vld.sshfl [vmem:[#allocation1 + $0x20] sm:$0xff pattern:$0x73625140]  ;;  %841 = vst [vmem:[#allocation1] ss:$4 sm:$0xff] %v803_v39  ;;  %v852_v45 = vunpack.c.l.b16 %v834_v42 }
  0xce   : > { %845 = vst [vmem:[#allocation1 + $0x20] ss:$4 sm:$0xff] %v804_v41  ;;  %v853_v47 = vunpack.c.l.b16 %v838_v44  ;;  %v1017_v39 = vld [vmem:[%s2144_s10 + $0x2] sm:$0x2]  ;;  %v1018_v42 = vld [vmem:[%s2144_s10 + $0x4] sm:$0x2] }
  0xcf   : > { %v862_v48 = vrot.slane %v852_v45, 5 }
  0xd0   : > { %v864_v51 = vrot.slane %v853_v47, 4  ;;  %v1020_v47 = vld [vmem:[%s2144_s10 + $0x8] sm:$0x2] }
  0xd1   : > { %v863_v53 = vsel %vm646_vm14, %v862_v48, %v861_v49  ;;  %v1021_v49 = vld [vmem:[%s2144_s10 + $0xa] sm:$0x2] }
  0xd2   : > { %v865_v58 = vsel %vm649_vm15, %v864_v51, %v863_v53  ;;  %v1022_v53 = vld [vmem:[%s2144_s10 + $0xc] sm:$0x2] }
  0xd4   : > { %v842_v54 = vld.sshfl [vmem:[#allocation1] sm:$0xff pattern:$0x73625140] }
  0xd5   : > { %v846_v55 = vld.sshfl [vmem:[#allocation1 + $0x20] sm:$0xff pattern:$0x73625140]  ;;  %v854_v56 = vunpack.c.l.b16 %v842_v54  ;;  %926 = vst [vmem:[#allocation1] ss:$4 sm:$0xff] %v805_v50 }
  0xd6   : > { %v855_v57 = vunpack.c.l.b16 %v846_v55  ;;  %931 = vst [vmem:[#allocation1 + $0x20] ss:$4 sm:$0xff] %v806_v52  ;;  %v1023_v54 = vld [vmem:[%s2144_s10 + $0xe] sm:$0x2] }
  0xd7   : > { %v866_v59 = vrot.slane %v854_v56, 3 }
  0xd8   : > { %v868_v60 = vrot.slane %v855_v57, 2  ;;  %v1219_v57 = vld [vmem:[%s2139_s20] sm:$0x2] }
  0xd9   : > { %v867_v61 = vsel %vm652_vm0, %v866_v59, %v865_v58  ;;  %v1220_v58 = vld [vmem:[%s2139_s20 + $0x2] sm:$0x2] }
  0xda   : > { %v869_v63 = vsel %vm655_vm1, %v868_v60, %v867_v61  ;;  %v1221_v61 = vld [vmem:[%s2139_s20 + $0x4] sm:$0x2] }
  0xdb   : > { %v870_v1 = vpack.c.b16 %v869_v63, %v869_v63 }
  0xdc   : > { %v2280_v2 = vld.sshfl [vmem:[#allocation1] sm:$0xff pattern:$0x73625140] }
  0xdd   : > { %v875_v3 = vsel %vm658_vm2, %v870_v1, 0  ;;  %v2283_v4 = vld.sshfl [vmem:[#allocation1 + $0x20] sm:$0xff pattern:$0x73625140]  ;;  %935 = vst [vmem:[#allocation1] ss:$4 sm:$0xff] %v807_v62 }
  0xde   : > { %884 = vmatpush.bf16.xpose.msra.mxu2 %v875_v3  ;;  %939 = vst [vmem:[#allocation1 + $0x20] ss:$4 sm:$0xff] %v808_v0  ;;  %v1222_v62 = vld [vmem:[%s2139_s20 + $0x6] sm:$0x2]  ;;  %v1223_v1 = vld [vmem:[%s2139_s20 + $0x8] sm:$0x2] }
  0xe4   : > { %v2287_v8 = vld.sshfl [vmem:[#allocation1] sm:$0xff pattern:$0x73625140] }
  0xe5   : > { %v2289_v10 = vld.sshfl [vmem:[#allocation1 + $0x20] sm:$0xff pattern:$0x73625140]  ;;  %943 = vst [vmem:[#allocation1] ss:$4 sm:$0xff] %v809_v5  ;;  %1757 = vmatmul.msk.bf16.vlgmr.msra.gmra.mxu2 %vm658_vm2, %v814_v6 }
  0xe6   : > { %947 = vst [vmem:[#allocation1 + $0x20] ss:$4 sm:$0xff] %v810_v7  ;;  %v1224_v6 = vld [vmem:[%s2139_s20 + $0xa] sm:$0x2] }
  0xec   : > { %v2294_v14 = vld.sshfl [vmem:[#allocation1] sm:$0xff pattern:$0x73625140] }
  0xed   : > { %v2296_v17 = vld.sshfl [vmem:[#allocation1 + $0x20] sm:$0xff pattern:$0x73625140]  ;;  %951 = vst [vmem:[#allocation1] ss:$4 sm:$0xff] %v811_v12 }
  0xee   : > { %955 = vst [vmem:[#allocation1 + $0x20] ss:$4 sm:$0xff] %v812_v13 }
  0xf4   : > { %v2300_v22 = vld.sshfl [vmem:[#allocation1] sm:$0xff pattern:$0x73625140] }
  0xf5   : > { %v2302_v25 = vld.sshfl [vmem:[#allocation1 + $0x20] sm:$0xff pattern:$0x73625140]  ;;  %1027 = vst [vmem:[#allocation1] ss:$4 sm:$0xff] %v1008_v18 }
  0xf6   : > { %1032 = vst [vmem:[#allocation1 + $0x20] ss:$4 sm:$0xff] %v1009_v21 }
  0xfc   : > { %v2306_v28 = vld.sshfl [vmem:[#allocation1] sm:$0xff pattern:$0x73625140] }
  0xfd   : > { %v2308_v29 = vld.sshfl [vmem:[#allocation1 + $0x20] sm:$0xff pattern:$0x73625140]  ;;  %1036 = vst [vmem:[#allocation1] ss:$4 sm:$0xff] %v1010_v26 }
  0xfe   : > { %1040 = vst [vmem:[#allocation1 + $0x20] ss:$4 sm:$0xff] %v1011_v27  ;;  %v1225_v27 = vld [vmem:[%s2139_s20 + $0xc] sm:$0x2] }
 0x104   : > { %v2312_v32 = vld.sshfl [vmem:[#allocation1] sm:$0xff pattern:$0x73625140] }
 0x105   : > { %v2314_v33 = vld.sshfl [vmem:[#allocation1 + $0x20] sm:$0xff pattern:$0x73625140]  ;;  %1044 = vst [vmem:[#allocation1] ss:$4 sm:$0xff] %v1012_v30 }
 0x106   : > { %1048 = vst [vmem:[#allocation1 + $0x20] ss:$4 sm:$0xff] %v1013_v31  ;;  %v1226_v31 = vld [vmem:[%s2139_s20 + $0xe] sm:$0x2]  ;;  %s2015_s20 = smov (!%p1763_p3), 8  }
 0x10c   : > { %v2318_v36 = vld.sshfl [vmem:[#allocation1] sm:$0xff pattern:$0x73625140] }
 0x10d   : > { %v2320_v37 = vld.sshfl [vmem:[#allocation1 + $0x20] sm:$0xff pattern:$0x73625140]  ;;  %1052 = vst [vmem:[#allocation1] ss:$4 sm:$0xff] %v1014_v34 }
 0x10e   : > { %1056 = vst [vmem:[#allocation1 + $0x20] ss:$4 sm:$0xff] %v1015_v35 }
 0x114   : > { %v2324_v40 = vld.sshfl [vmem:[#allocation1] sm:$0xff pattern:$0x73625140] }
 0x115   : > { %v2326_v41 = vld.sshfl [vmem:[#allocation1 + $0x20] sm:$0xff pattern:$0x73625140]  ;;  %1137 = vst [vmem:[#allocation1] ss:$4 sm:$0xff] %v1016_v38 }
 0x116   : > { %1142 = vst [vmem:[#allocation1 + $0x20] ss:$4 sm:$0xff] %v1017_v39 }
 0x11c   : > { %v2330_v44 = vld.sshfl [vmem:[#allocation1] sm:$0xff pattern:$0x73625140] }
 0x11d   : > { %v2332_v45 = vld.sshfl [vmem:[#allocation1 + $0x20] sm:$0xff pattern:$0x73625140]  ;;  %1146 = vst [vmem:[#allocation1] ss:$4 sm:$0xff] %v1018_v42 }
 0x11e   : > { %1150 = vst [vmem:[#allocation1 + $0x20] ss:$4 sm:$0xff] %v1019_v43 }
 0x122   : > { %v2334_v46 = vpop.f32.mrf.mxu0 }
 0x123   : > { %v679_v48 = vsel %vm658_vm2, %v2334_v46, -inf }
 0x124   : > { %680 = vmax.xlane.f32.xlu0 %v679_v48  ;;  %v2340_v50 = vld.sshfl [vmem:[#allocation1] sm:$0xff pattern:$0x73625140] }
 0x125   : > { %v2342_v51 = vld.sshfl [vmem:[#allocation1 + $0x20] sm:$0xff pattern:$0x73625140]  ;;  %1154 = vst [vmem:[#allocation1] ss:$4 sm:$0xff] %v1020_v47 }
 0x126   : > { %1158 = vst [vmem:[#allocation1 + $0x20] ss:$4 sm:$0xff] %v1021_v49 }
 0x12a   : > { %v676_v52 = vpop.f32.mrf.mxu0 }
 0x12c   : > { %v2346_v55 = vld.sshfl [vmem:[#allocation1] sm:$0xff pattern:$0x73625140] }
 0x12d   : > { %v2348_v56 = vld.sshfl [vmem:[#allocation1 + $0x20] sm:$0xff pattern:$0x73625140]  ;;  %1162 = vst [vmem:[#allocation1] ss:$4 sm:$0xff] %v1022_v53 }
 0x12e   : > { %1166 = vst [vmem:[#allocation1 + $0x20] ss:$4 sm:$0xff] %v1023_v54 }
 0x134   : > { %v2352_v59 = vld.sshfl [vmem:[#allocation1] sm:$0xff pattern:$0x73625140] }
 0x135   : > { %v2354_v60 = vld.sshfl [vmem:[#allocation1 + $0x20] sm:$0xff pattern:$0x73625140]  ;;  %1238 = vst [vmem:[#allocation1] ss:$4 sm:$0xff] %v1219_v57 }
 0x136   : > { %1243 = vst [vmem:[#allocation1 + $0x20] ss:$4 sm:$0xff] %v1220_v58 }
 0x13c   : > { %v1239_v63 = vld.sshfl [vmem:[#allocation1] sm:$0xff pattern:$0x73625140] }
 0x13d   : > { %v1244_v0 = vld.sshfl [vmem:[#allocation1 + $0x20] sm:$0xff pattern:$0x73625140]  ;;  %1247 = vst [vmem:[#allocation1] ss:$4 sm:$0xff] %v1221_v61  ;;  %v1270_v3 = vunpack.c.l.b16 %v1239_v63 }
 0x13e   : > { %1251 = vst [vmem:[#allocation1 + $0x20] ss:$4 sm:$0xff] %v1222_v62  ;;  %v1271_v5 = vunpack.c.l.b16 %v1244_v0 }
 0x13f   : > { %v1278_v18 = vrot.slane %v1270_v3, 3 }
 0x140   : > { %v1279_v21 = vrot.slane %v1271_v5, 2 }
 0x142   : > { %v1280_v30 = vsel %vm637_vm11, %v1279_v21, %v1278_v18  ;;  %v2008_v18 = vmov 0   ;;  %v2375_v21 = vld [vmem:[#allocation3] sm:$0xff] }
 0x143   : > { %1866 = vset.pattern.permute.xlu0 %v2008_v18  ;;  %1867 = vset.pattern.permute.xlu2 %v2008_v18 }
 0x144   : > { %v1248_v7 = vld.sshfl [vmem:[#allocation1] sm:$0xff pattern:$0x73625140]  ;;  %1868 = vset.pattern.permute.xlu1 %v2008_v18 }
 0x145   : > { %v1252_v12 = vld.sshfl [vmem:[#allocation1 + $0x20] sm:$0xff pattern:$0x73625140]  ;;  %1255 = vst [vmem:[#allocation1] ss:$4 sm:$0xff] %v1223_v1  ;;  %v1272_v13 = vunpack.c.l.b16 %v1248_v7 }
 0x146   : > { %1259 = vst [vmem:[#allocation1 + $0x20] ss:$4 sm:$0xff] %v1224_v6  ;;  %v1273_v35 = vunpack.c.l.b16 %v1252_v12  ;;  %v1236_v6 = vld [vmem:[#allocation2 + $0xc] sm:$0xf] }
 0x147   : > { %v1281_v26 = vrot.slane %v1272_v13, 1 }
 0x149   : > { %v1282_v42 = vsel %vm640_vm12, %v1281_v26, %v1280_v30 }
 0x14a   : > { %v1283_v48 = vsel %vm643_vm13, %v1273_v35, %v1282_v42  ;;  %v891_v35 = vld [vmem:[#allocation3 + $0x8] sm:$0xff] }
 0x14c   : > { %v1256_v34 = vld.sshfl [vmem:[#allocation1] sm:$0xff pattern:$0x73625140] }
 0x14d   : > { %v1260_v38 = vld.sshfl [vmem:[#allocation1 + $0x20] sm:$0xff pattern:$0x73625140]  ;;  %1263 = vst [vmem:[#allocation1] ss:$4 sm:$0xff] %v1225_v27  ;;  %v1274_v39 = vunpack.c.l.b16 %v1256_v34 }
 0x14e   : > { %1267 = vst [vmem:[#allocation1 + $0x20] ss:$4 sm:$0xff] %v1226_v31  ;;  %v1275_v43 = vunpack.c.l.b16 %v1260_v38 }
 0x14f   : > { %v1284_v47 = vrot.slane %v1274_v39, 7 }
 0x150   : > { %v1286_v49 = vrot.slane %v1275_v43, 6 }
 0x151   : > { %v1285_v52 = vsel %vm646_vm14, %v1284_v47, %v1283_v48 }
 0x152   : > { %v1287_v61 = vsel %vm649_vm15, %v1286_v49, %v1285_v52  ;;  %v745_v49 = vunpack.c.l.b16 %v2242_v11 }
 0x154   : > { %v1264_v53 = vld.sshfl [vmem:[#allocation1] sm:$0xff pattern:$0x73625140] }
 0x155   : > { %v1268_v54 = vld.sshfl [vmem:[#allocation1 + $0x20] sm:$0xff pattern:$0x73625140]  ;;  %v1276_v57 = vunpack.c.l.b16 %v1264_v53  ;;  %v746_v53 = vunpack.c.l.b16 %v2246_v15 }
 0x156   : > { %v1277_v58 = vunpack.c.l.b16 %v1268_v54 }
 0x157   : > { %v1288_v62 = vrot.slane %v1276_v57, 5  ;;  %v744_v57 = vunpack.c.l.b16 %v2239_v9 }
 0x158   : > { %v1290_v63 = vrot.slane %v1277_v58, 4  ;;  %v747_v58 = vunpack.c.l.b16 %v2249_v16 }
 0x159   : > { %v1289_v0 = vsel %vm652_vm0, %v1288_v62, %v1287_v61  ;;  %v752_v61 = vrot.slane %v745_v49, 7  ;;  %v748_v62 = vunpack.c.l.b16 %v2253_v19  ;;  %v1064_v49 = vunpack.c.l.b16 %v2320_v37 }
 0x15a   : > { %v1291_v1 = vsel %vm655_vm1, %v1290_v63, %v1289_v0  ;;  %v754_v63 = vrot.slane %v746_v53, 6  ;;  %v749_v0 = vunpack.c.l.b16 %v2255_v20  ;;  %v756_v11 = vrot.slane %v747_v58, 5 }
 0x15b   : > { %v1292_v3 = vpack.c.b16 %v1291_v1, %v1291_v1  ;;  %v753_v1 = vsel %vm637_vm11, %v752_v61, %v744_v57  ;;  %v1075_v61 = vrot.slane %v1064_v49, 5 }
 0x15c   : > { %v755_v15 = vsel %vm640_vm12, %v754_v63, %v753_v1 }
 0x15d   : > { %v1297_v5 = vsel %vm658_vm2, %v1292_v3, 0  ;;  %v750_v3 = vunpack.c.l.b16 %v2259_v23  ;;  %v757_v9 = vsel %vm643_vm13, %v756_v11, %v755_v15 }
 0x15e   : > { %1306 = vmatpush.bf16.xpose.msrb.mxu0 %v1297_v5  ;;  %v758_v5 = vrot.slane %v748_v62, 4 }
 0x160   : > { %v759_v16 = vsel %vm646_vm14, %v758_v5, %v757_v9 }
 0x165   : > { %1761 = vmatmul.msk.bf16.vlgmr.msrb.gmra.mxu0 %vm658_vm2, %v1236_v6  ;;  %v751_v6 = vunpack.c.l.b16 %v2261_v24 }
 0x167   : > { %v764_v18 = vrot.slane %v751_v6, 1 }
 0x168   : > { %v2371_v7 = vpop.f32.mrf.mxu2 }
 0x169   : > { %v892_v12 = vsel %vm658_vm2, %v2371_v7, -inf }
 0x16a   : > { %893 = vmax.xlane.f32.xlu1 %v892_v12  ;;  %v760_v12 = vrot.slane %v749_v0, 3 }
 0x16c   : > { %v761_v19 = vsel %vm649_vm15, %v760_v12, %v759_v16  ;;  %v1025_v16 = vld [vmem:[#allocation2 + $0x8] sm:$0xf] }
 0x170   : > { %v888_v13 = vpop.f32.mrf.mxu2 }
 0x171   : > { %v762_v13 = vrot.slane %v750_v3, 2 }
 0x173   : > { %v763_v20 = vsel %vm652_vm0, %v762_v13, %v761_v19  ;;  %v958_v13 = vunpack.c.l.b16 %v2280_v2  ;;  %v959_v19 = vunpack.c.l.b16 %v2283_v4 }
 0x197   : > { %v681_v26 = vpop.xlane.xlu0 %680 }
 0x198   : > { %v2378_v27 = vmax.f32 %v2375_v21, %v681_v26  ;;  %v765_v26 = vsel %vm655_vm1, %v764_v18, %v763_v20  ;;  %v961_v18 = vunpack.c.l.b16 %v2289_v10  ;;  %v966_v20 = vrot.slane %v958_v13, 1 }
 0x199   : > { %v766_v23 = vpack.c.b16 %v765_v26, %v765_v26  ;;  %v962_v26 = vunpack.c.l.b16 %v2294_v14 }
 0x19a   : > { %v683_v30 = vsub.f32 %v2375_v21, %v2378_v27  ;;  %688 = vperm.xlu0 %1866, %v2378_v27  }
 0x19b   : > { %v772_v24 = vsel %vm770_vm3, %v766_v23, 0  ;;  %v972_v2 = vrot.slane %v962_v26, 5 }
 0x19c   : > { %v684_v31 = vmul.f32 1.442695, %v683_v30  ;;  %v1059_v30 = vunpack.c.l.b16 %v2306_v28  ;;  %781 = vmatpush.bf16.msra.mxu1 %v772_v24  ;;  %v1065_v28 = vunpack.c.l.b16 %v2324_v40  ;;  %v964_v24 = vunpack.c.l.b16 %v2300_v22 }
 0x19e   : > { %1869 = vpow2.f32 %v684_v31  ;;  %v1060_v31 = vunpack.c.l.b16 %v2308_v29  ;;  %v1066_v29 = vunpack.c.l.b16 %v2326_v41 }
 0x1a0   : > { %v1079_v62 = vrot.slane %v1066_v29, 3 }
 0x1a4   : > { %v2383_v34 = vpop.eup %1869 }
 0x1a5   : > { %706 = vperm.xlu0 %1866, %v2383_v34  }
 0x1ad   : > { %908 = vrot.lane.b32.xlu0 %v891_v35, %s2009_s18 }
 0x1dd   : > { %v894_v38 = vpop.xlane.xlu1 %893 }
 0x1de   : > { %v2387_v39 = vmax.f32 %v891_v35, %v894_v38  ;;  %v1067_v38 = vrot.slane %v1059_v30, 2  ;;  %v963_v30 = vunpack.c.l.b16 %v2296_v17 }
 0x1e0   : > { %v896_v42 = vsub.f32 %v891_v35, %v2387_v39  ;;  %v1062_v35 = vunpack.c.l.b16 %v2314_v33 }
 0x1e2   : > { %v897_v43 = vmul.f32 1.442695, %v896_v42  ;;  %v2390_v47 = vpop.f32.mrf.mxu0  ;;  %v1068_v42 = vrot.slane %v1060_v31, 1  ;;  %v970_v31 = vrot.slane %v961_v18, 6 }
 0x1e3   : > { %v1314_v48 = vsel %vm658_vm2, %v2390_v47, -inf }
 0x1e4   : > { %1871 = vpow2.f32 %v897_v43  ;;  %1315 = vmax.xlane.f32.xlu2 %v1314_v48  ;;  %v1061_v43 = vunpack.c.l.b16 %v2312_v32  ;;  %v1063_v48 = vunpack.c.l.b16 %v2318_v36  ;;  %v1069_v53 = vsel %vm637_vm11, %v1068_v42, %v1067_v38 }
 0x1e5   : > { %v1077_v36 = vrot.slane %v1065_v28, 4  ;;  %v974_v38 = vrot.slane %v963_v30, 4  ;;  %v976_v42 = vrot.slane %v964_v24, 3 }
 0x1e6   : > { %v1070_v57 = vsel %vm640_vm12, %v1061_v43, %v1069_v53  ;;  %v1073_v58 = vrot.slane %v1063_v48, 6  ;;  %v2456_v53 = vld [vmem:[#allocation3 + $0x18] sm:$0xff] }
 0x1ea   : > { %v2395_v52 = vpop.eup %1871  ;;  %v1310_v54 = vpop.f32.mrf.mxu0 }
 0x1eb   : > { %920 = vperm.xlu0 %1866, %v2395_v52   ;;  %v1071_v54 = vrot.slane %v1062_v35, 7 }
 0x1ed   : > { %v1072_v33 = vsel %vm643_vm13, %v1071_v54, %v1070_v57 }
 0x1ee   : > { %v1074_v32 = vsel %vm646_vm14, %v1073_v58, %v1072_v33 }
 0x1ef   : > { %v1076_v37 = vsel %vm649_vm15, %v1075_v61, %v1074_v32  ;;  %v703_v61 = vld [vmem:[#allocation4] sm:$0xff] }
 0x1f0   : > { %v1078_v63 = vsel %vm652_vm0, %v1077_v36, %v1076_v37  ;;  %v1228_v37 = vld [vmem:[%s2144_s10 + $0x2] sm:$0x2] }
 0x1f1   : > { %v1080_v40 = vsel %vm655_vm1, %v1079_v62, %v1078_v63  ;;  %1353 = vst [vmem:[#allocation1 + $0x20] ss:$4 sm:$0xff] %v1228_v37  ;;  %v1229_v63 = vld [vmem:[%s2144_s10 + $0x4] sm:$0x2] }
 0x1f2   : > { %v1081_v0 = vpack.c.b16 %v1080_v40, %v1080_v40  ;;  %v1230_v40 = vld [vmem:[%s2144_s10 + $0x6] sm:$0x2] }
 0x1f3   : > { %v917_v37 = vld [vmem:[#allocation4 + $0x8] sm:$0xff] }
 0x1f4   : > { %v1086_v41 = vsel %vm658_vm2, %v1081_v0, 0 }
 0x1f5   : > { %1095 = vmatpush.bf16.xpose.msrb.mxu1 %v1086_v41 }
 0x1f8   : > { %v1354_v41 = vld.sshfl [vmem:[#allocation1 + $0x20] sm:$0xff pattern:$0x73625140] }
 0x1f9   : > { %1361 = vst [vmem:[#allocation1 + $0x20] ss:$4 sm:$0xff] %v1230_v40 }
 0x1fc   : > { %901 = vperm.xlu2 %1867, %v2387_v39  }
 0x200   : > { %v1362_v13 = vld.sshfl [vmem:[#allocation1 + $0x20] sm:$0xff pattern:$0x73625140] }
 0x201   : > { %v1383_v24 = vunpack.c.l.b16 %v1362_v13  ;;  %v1169_v13 = vunpack.c.l.b16 %v2330_v44 }
 0x20c   : > { %v689_v1 = vpop.permute.xlu0 %688 }
 0x20d   : > { %v691_v11 = vsub.f32 %v2334_v46, %v689_v1  ;;  %v960_v46 = vunpack.c.l.b16 %v2287_v8  ;;  %v965_v8 = vunpack.c.l.b16 %v2302_v25 }
 0x20f   : > { %v692_v3 = vmul.f32 1.442695, %v691_v11  ;;  %v968_v23 = vrot.slane %v960_v46, 7  ;;  %v978_v43 = vrot.slane %v965_v8, 2 }
 0x211   : > { %1873 = vpow2.f32 %v692_v3  ;;  %v1231_v3 = vld [vmem:[%s2144_s10 + $0x8] sm:$0x2] }
 0x217   : > { %v2431_v15 = vpop.eup %1873  ;;  %v707_v5 = vpop.permute.xlu0 %706 }
 0x218   : > { %v710_v6 = vpack.c.bf16 %v2431_v15, %v2431_v15  ;;  %v709_v32 = vmul.f32 %v707_v5, %v703_v61 }
 0x21a   : > { %1756 = vmatmul.msk.bf16.vlgmr.msra.gmra.mxu1 %vm658_vm2, %v710_v6  ;;  %v1381_v6 = vunpack.c.l.b16 %v1354_v41 }
 0x21c   : > { %v1389_v18 = vrot.slane %v1381_v6, 2  ;;  %v699_v6 = vsel %vm658_vm2, %v2431_v15, 0.0  ;;  %v1174_v15 = vunpack.c.l.b16 %v2348_v56 }
 0x21f   : > { %v909_v9 = vpop.permute.xlu0 %908 }
 0x220   : > { %v2437_v12 = vmul.f32 %v2395_v52, %v909_v9  ;;  %v967_v52 = vsel %vm637_vm11, %v959_v19, %v966_v20  ;;  %v1232_v9 = vld [vmem:[%s2144_s10 + $0xa] sm:$0x2] }
 0x221   : > { %v969_v35 = vsel %vm640_vm12, %v968_v23, %v967_v52  ;;  %1369 = vst [vmem:[#allocation1 + $0x20] ss:$4 sm:$0xff] %v1232_v9  ;;  %v1233_v23 = vld [vmem:[%s2144_s10 + $0xc] sm:$0x2]  ;;  %v1234_v52 = vld [vmem:[%s2144_s10 + $0xe] sm:$0x2] }
 0x222   : > { %v971_v4 = vsel %vm643_vm13, %v970_v31, %v969_v35 }
 0x223   : > { %v973_v10 = vsel %vm646_vm14, %v972_v2, %v971_v4 }
 0x224   : > { %v975_v14 = vsel %vm649_vm15, %v974_v38, %v973_v10 }
 0x225   : > { %v977_v17 = vsel %vm652_vm0, %v976_v42, %v975_v14 }
 0x226   : > { %v979_v48 = vsel %vm655_vm1, %v978_v43, %v977_v17 }
 0x227   : > { %v980_v49 = vpack.c.b16 %v979_v48, %v979_v48 }
 0x228   : > { %v1370_v35 = vld.sshfl [vmem:[#allocation1 + $0x20] sm:$0xff pattern:$0x73625140] }
 0x229   : > { %v985_v22 = vsel %vm770_vm3, %v980_v49, 0  ;;  %1377 = vst [vmem:[#allocation1 + $0x20] ss:$4 sm:$0xff] %v1234_v52  ;;  %v1385_v38 = vunpack.c.l.b16 %v1370_v35  ;;  %v1185_v35 = vrot.slane %v1174_v15, 5 }
 0x22a   : > { %1759 = vmatmul.msk.bf16.vlgmr.msrb.gmra.mxu1 %vm658_vm2, %v1025_v16  ;;  %994 = vmatpush.bf16.msra.mxu3 %v985_v22 }
 0x22b   : > { %v1396_v17 = vrot.slane %v1385_v38, 6 }
 0x230   : > { %v1378_v22 = vld.sshfl [vmem:[#allocation1 + $0x20] sm:$0xff pattern:$0x73625140] }
 0x257   : > { %v1316_v25 = vpop.xlane.xlu2 %1315 }
 0x258   : > { %v2459_v54 = vmax.f32 %v2456_v53, %v1316_v25 }
 0x25a   : > { %1323 = vperm.xlu2 %1867, %v2459_v54  }
 0x25f   : > { %v902_v28 = vpop.permute.xlu2 %901 }
 0x260   : > { %v904_v29 = vsub.f32 %v2371_v7, %v902_v28  ;;  %v1227_v7 = vld [vmem:[%s2144_s10] sm:$0x2]  ;;  %v1387_v28 = vunpack.c.l.b16 %v1378_v22 }
 0x261   : > { %1348 = vst [vmem:[#allocation1] ss:$4 sm:$0xff] %v1227_v7 }
 0x262   : > { %v905_v57 = vmul.f32 1.442695, %v904_v29  ;;  %695 = vrot.lane.b32.xlu2 %v2375_v21, %s2009_s18 }
 0x264   : > { %1875 = vpow2.f32 %v905_v57 }
 0x268   : > { %v1349_v0 = vld.sshfl [vmem:[#allocation1] sm:$0xff pattern:$0x73625140] }
 0x269   : > { %1357 = vst [vmem:[#allocation1] ss:$4 sm:$0xff] %v1229_v63  ;;  %v1380_v5 = vunpack.c.l.b16 %v1349_v0 }
 0x26a   : > { %v2465_v58 = vpop.eup %1875 }
 0x26b   : > { %v924_v33 = vpack.c.bf16 %v2465_v58, %v2465_v58  ;;  %v1388_v19 = vrot.slane %v1380_v5, 3 }
 0x26d   : > { %1758 = vmatmul.msk.bf16.vlgmr.msra.gmra.mxu3 %vm658_vm2, %v924_v33  ;;  %v1390_v30 = vsel %vm637_vm11, %v1389_v18, %v1388_v19  ;;  %v1400_v33 = vrot.slane %v1387_v28, 4  ;;  %v1172_v19 = vunpack.c.l.b16 %v2342_v51  ;;  %v1177_v18 = vrot.slane %v1169_v13, 2 }
 0x26f   : > { %v1181_v52 = vrot.slane %v1172_v19, 7 }
 0x270   : > { %v1358_v16 = vld.sshfl [vmem:[#allocation1] sm:$0xff pattern:$0x73625140] }
 0x271   : > { %1365 = vst [vmem:[#allocation1] ss:$4 sm:$0xff] %v1231_v3  ;;  %v1382_v46 = vunpack.c.l.b16 %v1358_v16 }
 0x273   : > { %v1391_v26 = vrot.slane %v1382_v46, 1  ;;  %v1170_v46 = vunpack.c.l.b16 %v2332_v45  ;;  %v1176_v45 = vunpack.c.l.b16 %v2354_v60 }
 0x275   : > { %v1392_v8 = vsel %vm640_vm12, %v1391_v26, %v1390_v30  ;;  %v1171_v26 = vunpack.c.l.b16 %v2340_v50 }
 0x276   : > { %v1393_v14 = vsel %vm643_vm13, %v1383_v24, %v1392_v8  ;;  %v1189_v8 = vrot.slane %v1176_v45, 3 }
 0x278   : > { %v1366_v31 = vld.sshfl [vmem:[#allocation1] sm:$0xff pattern:$0x73625140] }
 0x279   : > { %1373 = vst [vmem:[#allocation1] ss:$4 sm:$0xff] %v1233_v23  ;;  %v1384_v2 = vunpack.c.l.b16 %v1366_v31  ;;  %v1173_v23 = vunpack.c.l.b16 %v2346_v55  ;;  %v1175_v31 = vunpack.c.l.b16 %v2352_v59 }
 0x27b   : > { %v1394_v42 = vrot.slane %v1384_v2, 7  ;;  %v1183_v44 = vrot.slane %v1173_v23, 6  ;;  %v1187_v50 = vrot.slane %v1175_v31, 4 }
 0x27d   : > { %v1395_v48 = vsel %vm646_vm14, %v1394_v42, %v1393_v14 }
 0x27e   : > { %v1397_v29 = vsel %vm649_vm15, %v1396_v17, %v1395_v48  ;;  %v1318_v48 = vsub.f32 %v2456_v53, %v2459_v54 }
 0x280   : > { %v1374_v49 = vld.sshfl [vmem:[#allocation1] sm:$0xff pattern:$0x73625140] }
 0x281   : > { %v1386_v25 = vunpack.c.l.b16 %v1374_v49  ;;  %v1319_v49 = vmul.f32 1.442695, %v1318_v48 }
 0x283   : > { %v1398_v57 = vrot.slane %v1386_v25, 5 }
 0x285   : > { %v1399_v61 = vsel %vm652_vm0, %v1398_v57, %v1397_v29 }
 0x297   : > { %v783_v36 = vpop.f32.mrf.mxu1 }
 0x298   : > { %v787_v62 = vadd.f32 %v783_v36, %v709_v32 }
 0x29a   : > { %788 = vst.msk [vmem:[#allocation4] sm:$0xff] %vm658_vm2, %v787_v62 }
 0x29f   : > { %v785_v21 = vpop.f32.mrf.mxu1 }
 0x2a0   : > { %v921_v21 = vpop.permute.xlu0 %920 }
 0x2a1   : > { %v923_v63 = vmul.f32 %v921_v21, %v917_v37 }
 0x2a7   : > { %v2475_v1 = vpop.f32.mrf.mxu1 }
 0x2a8   : > { %v1103_v11 = vsel %vm658_vm2, %v2475_v1, -inf }
 0x2a9   : > { %1104 = vmax.xlane.f32.xlu1 %v1103_v11  ;;  %v2498_v11 = vld [vmem:[#allocation3 + $0x10] sm:$0xff] }
 0x2af   : > { %v1099_v20 = vpop.f32.mrf.mxu1 }
 0x2b0   : > { %v1178_v20 = vrot.slane %v1170_v46, 1  ;;  %v1128_v46 = vld [vmem:[#allocation4 + $0x10] sm:$0xff] }
 0x2b2   : > { %v1179_v30 = vsel %vm637_vm11, %v1178_v20, %v1177_v18 }
 0x2b3   : > { %v1180_v24 = vsel %vm640_vm12, %v1171_v26, %v1179_v30 }
 0x2b4   : > { %v1324_v4 = vpop.permute.xlu2 %1323  ;;  %v1182_v51 = vsel %vm643_vm13, %v1181_v52, %v1180_v24 }
 0x2b5   : > { %v1326_v10 = vsub.f32 %v2390_v47, %v1324_v4  ;;  %v1401_v47 = vsel %vm655_vm1, %v1400_v33, %v1399_v61  ;;  %v1184_v2 = vsel %vm646_vm14, %v1183_v44, %v1182_v51  ;;  %v912_v61 = vsel %vm658_vm2, %v2465_v58, 0.0 }
 0x2b6   : > { %v1402_v36 = vpack.c.b16 %v1401_v47, %v1401_v47  ;;  %v1186_v55 = vsel %vm649_vm15, %v1185_v35, %v1184_v2 }
 0x2b7   : > { %v1327_v43 = vmul.f32 1.442695, %v1326_v10  ;;  %v1188_v56 = vsel %vm652_vm0, %v1187_v50, %v1186_v55 }
 0x2b8   : > { %v1407_v62 = vsel %vm770_vm3, %v1402_v36, 0  ;;  %v1190_v4 = vsel %vm655_vm1, %v1189_v8, %v1188_v56 }
 0x2b9   : > { %1877 = vpow2.f32 %v1327_v43  ;;  %1416 = vmatpush.bf16.msrb.mxu2 %v1407_v62  ;;  %v1191_v38 = vpack.c.b16 %v1190_v4, %v1190_v4  ;;  %v1339_v62 = vld [vmem:[#allocation4 + $0x18] sm:$0xff] }
 0x2bb   : > { %v1196_v59 = vsel %vm770_vm3, %v1191_v38, 0 }
 0x2bc   : > { %1205 = vmatpush.bf16.msrb.mxu3 %v1196_v59  ;;  %v696_v25 = vpop.permute.xlu2 %695 }
 0x2bd   : > { %v698_v28 = vmul.f32 %v2383_v34, %v696_v25 }
 0x2bf   : > { %v2490_v32 = vpop.eup %1877 }
 0x2c0   : > { %v1346_v7 = vpack.c.bf16 %v2490_v32, %v2490_v32 }
 0x2c2   : > { %1762 = vmatmul.msk.bf16.vlgmr.msrb.gmra.mxu2 %vm658_vm2, %v1346_v7 }
 0x2f0   : > { %v996_v40 = vpop.f32.mrf.mxu3 }
 0x2f1   : > { %v1000_v0 = vadd.f32 %v996_v40, %v923_v63 }
 0x2f3   : > { %1001 = vst.msk [vmem:[#allocation4 + $0x8] sm:$0xff] %vm658_vm2, %v1000_v0 }
 0x2f8   : > { %v998_v41 = vpop.f32.mrf.mxu3 }
 0x31c   : > { %v1105_v3 = vpop.xlane.xlu1 %1104 }
 0x31d   : > { %v2501_v5 = vmax.f32 %v2498_v11, %v1105_v3  ;;  %v1334_v3 = vsel %vm658_vm2, %v2490_v32, 0.0 }
 0x31f   : > { %1112 = vperm.xlu1 %1868, %v2501_v5  }
 0x345   : > { %v2506_v9 = vpop.f32.mrf.mxu2 }
 0x349   : > { %700 = vadd.xlane.f32.xlu1 %v699_v6 }
 0x34d   : > { %v1420_v16 = vpop.f32.mrf.mxu2 }
 0x362   : > { %1330 = vrot.lane.b32.xlu1 %v2456_v53, %s2009_s18 }
 0x391   : > { %v1113_v10 = vpop.permute.xlu1 %1112 }
 0x392   : > { %v1115_v60 = vsub.f32 %v2475_v1, %v1113_v10 }
 0x394   : > { %v1116_v42 = vmul.f32 1.442695, %v1115_v60 }
 0x396   : > { %1879 = vpow2.f32 %v1116_v42 }
 0x397   : > { %1881 = vpow2.f32 %v1319_v49 }
 0x39c   : > { %v1880_v14 = vpop.eup %1879 }
 0x39d   : > { %v1123_v43 = vsel %vm658_vm2, %v1880_v14, 0.0  ;;  %v1135_v17 = vpack.c.bf16 %v1880_v14, %v1880_v14  ;;  %v1882_v22 = vpop.eup %1881 }
 0x39e   : > { %1124 = vadd.xlane.f32.xlu1 %v1123_v43 }
 0x39f   : > { %1760 = vmatmul.msk.bf16.vlgmr.msrb.gmra.mxu3 %vm658_vm2, %v1135_v17 }
 0x3b7   : > { %1342 = vperm.xlu1 %1868, %v1882_v22  }
 0x3bc   : > { %v701_v1 = vpop.xlane.xlu1 %700 }
 0x3bd   : > { %v702_v29 = vadd.f32 %v701_v1, %v698_v28 }
 0x3bf   : > { %790 = vrot.lane.b32.xlu2 %v702_v29, %s2010_s19 }
 0x3d4   : > { %v1331_v57 = vpop.permute.xlu1 %1330 }
 0x3d5   : > { %v1333_v33 = vmul.f32 %v1882_v22, %v1331_v57 }
 0x3e8   : > { %913 = vadd.xlane.f32.xlu2 %v912_v61 }
 0x411   : > { %v1125_v34 = vpop.xlane.xlu1 %1124 }
 0x419   : > { %v791_v53 = vpop.permute.xlu2 %790 }
 0x41a   : > { %v794_v47 = vsel %vm793_vm4, %v2378_v27, %v791_v53  ;;  %v1107_v27 = vsub.f32 %v2498_v11, %v2501_v5 }
 0x41b   : > { %796 = vst.msk [vmem:[#allocation3] sm:$0xff] %vm795_vm5, %v794_v47 }
 0x41c   : > { %v1108_v0 = vmul.f32 1.442695, %v1107_v27 }
 0x41e   : > { %1883 = vpow2.f32 %v1108_v0 }
 0x422   : > { %v1207_v36 = vpop.f32.mrf.mxu3 }
 0x424   : > { %v1884_v41 = vpop.eup %1883 }
 0x429   : > { %v1343_v7 = vpop.permute.xlu1 %1342 }
 0x42a   : > { %v1345_v37 = vmul.f32 %v1343_v7, %v1339_v62  ;;  %v1209_v21 = vpop.f32.mrf.mxu3 }
 0x42c   : > { %v1422_v63 = vadd.f32 %v2506_v9, %v1345_v37 }
 0x42e   : > { %1423 = vst.msk [vmem:[#allocation4 + $0x18] sm:$0xff] %vm658_vm2, %v1422_v63 }
 0x45b   : > { %v914_v58 = vpop.xlane.xlu2 %913 }
 0x45c   : > { %v915_v40 = vadd.f32 %v914_v58, %v2437_v12 }
 0x45e   : > { %1003 = vrot.lane.b32.xlu0 %v915_v40, %s2010_s19 }
 0x466   : > { %1119 = vrot.lane.b32.xlu0 %v2498_v11, %s2009_s18 }
 0x46e   : > { %1131 = vperm.xlu0 %1866, %v1884_v41  }
 0x498   : > { %1335 = vadd.xlane.f32.xlu0 %v1334_v3 }
 0x4d0   : > { %v1004_v6 = vpop.permute.xlu0 %1003 }
 0x4d1   : > { %v1006_v12 = vsel %vm793_vm4, %v2387_v39, %v1004_v6 }
 0x4d2   : > { %1007 = vst.msk [vmem:[#allocation3 + $0x8] sm:$0xff] %vm795_vm5, %v1006_v12 }
 0x4d8   : > { %v1120_v9 = vpop.permute.xlu0 %1119 }
 0x4d9   : > { %v1122_v16 = vmul.f32 %v1884_v41, %v1120_v9 }
 0x4db   : > { %v1126_v13 = vadd.f32 %v1125_v34, %v1122_v16 }
 0x4dd   : > { %1214 = vrot.lane.b32.xlu2 %v1126_v13, %s2010_s19 }
 0x4e0   : > { %v1132_v11 = vpop.permute.xlu0 %1131 }
 0x4e1   : > { %v1134_v19 = vmul.f32 %v1132_v11, %v1128_v46 }
 0x4e3   : > { %v1211_v18 = vadd.f32 %v1207_v36, %v1134_v19 }
 0x4e5   : > { %1212 = vst.msk [vmem:[#allocation4 + $0x10] sm:$0xff] %vm658_vm2, %v1211_v18 }
 0x50b   : > { %v1336_v20 = vpop.xlane.xlu0 %1335 }
 0x50c   : > { %v1337_v32 = vadd.f32 %v1336_v20, %v1333_v33 }
 0x50e   : > { %1425 = vrot.lane.b32.xlu2 %v1337_v32, %s2010_s19 }
 0x537   : > { %v1215_v26 = vpop.permute.xlu2 %1214 }
 0x538   : > { %v1217_v39 = vsel %vm793_vm4, %v2501_v5, %v1215_v26 }
 0x539   : > { %1218 = vst.msk [vmem:[#allocation3 + $0x10] sm:$0xff] %vm795_vm5, %v1217_v39 }
 0x566   : > { %1433 = sbr.rel (%p1763_p3) target bundleno = 1668 (0x684), region = 40 }
 0x568   : > { %v1426_v23 = vpop.permute.xlu2 %1425 }
 0x569   : > { %v1428_v15 = vsel %vm793_vm4, %v2459_v54, %v1426_v23 }
 0x56a   : > { %1429 = vst.msk [vmem:[#allocation3 + $0x18] sm:$0xff] %vm795_vm5, %v1428_v15 }
 0x56b   : > { %v1436_v52 = vld [vmem:[#allocation3 + $0x10] sm:$0xff]  ;;  %v2011_v31 = vmov 1   ;;  %v1435_v24 = vld [vmem:[#allocation3 + $0x8] sm:$0xff]  ;;  %v1434_v5 = vld [vmem:[#allocation3] sm:$0xff]  ;;  %v2012_v8 = vmov 1983009808  }
 0x56c   : > { %1886 = vset.pattern.permute.xlu1 %v2011_v31  ;;  %1885 = vset.pattern.permute.xlu0 %v2011_v31  ;;  %v1445_v50 = vld [vmem:[#allocation4 + $0x18] sm:$0xff]  ;;  %v1444_v55 = vld [vmem:[#allocation4 + $0x10] sm:$0xff]  ;;  %v1476_v56 = vunpack.c.l.s4 %v2012_v8  ;;  %v1443_v59 = vld [vmem:[#allocation4 + $0x8] sm:$0xff]  ;;  %vm1471_vm6 = vcmask 1047556   ;;  %v2013_v17 = vmov 1934713408  }
 0x56d   : > { %v1442_v10 = vld [vmem:[#allocation4] sm:$0xff]  ;;  %v1500_v48 = vunpack.c.l.s4 %v2013_v17  ;;  %vm1594_vm7 = vcmask 130048   ;;  %vm1596_vm8 = vcmask 195584   ;;  %vm1599_vm9 = vcmask 257024  }
 0x56e   : > { %v1477_v60 = vunpack.c.0.s8 %v1476_v56 }
 0x56f   : > { %v1501_v53 = vunpack.c.0.s8 %v1500_v48 }
 0x571   : > { %v1437_v30 = vld [vmem:[#allocation3 + $0x18] sm:$0xff] }
 0x572   : > { %1887 = vrcp.f32 %v1437_v30 }
 0x573   : > { %1889 = vrcp.f32 %v1436_v52 }
 0x574   : > { %1891 = vrcp.f32 %v1435_v24 }
 0x575   : > { %1893 = vrcp.f32 %v1434_v5 }
 0x578   : > { %v1888_v44 = vpop.eup %1887 }
 0x579   : > { %v1890_v45 = vpop.eup %1889  ;;  %1463 = vperm.xlu1 %1886, %v1888_v44  }
 0x57a   : > { %1458 = vperm.xlu0 %1885, %v1890_v45   ;;  %v1892_v54 = vpop.eup %1891 }
 0x57b   : > { %v1894_v51 = vpop.eup %1893 }
 0x581   : > { %1453 = vperm.xlu1 %1886, %v1892_v54  }
 0x582   : > { %1448 = vperm.xlu0 %1885, %v1894_v51  }
 0x5eb   : > { %v1464_v35 = vpop.permute.xlu1 %1463 }
 0x5ec   : > { %v1459_v2 = vpop.permute.xlu0 %1458  ;;  %v1469_v4 = vmul.f32 %v1464_v35, %v1445_v50 }
 0x5ed   : > { %v1468_v38 = vmul.f32 %v1459_v2, %v1444_v55 }
 0x5ee   : > { %v1483_v14 = vrot.slane %v1469_v4, 4 }
 0x5ef   : > { %v1470_v22 = vrot.slane %v1468_v38, 4 }
 0x5f3   : > { %v1454_v42 = vpop.permute.xlu1 %1453 }
 0x5f4   : > { %v1467_v43 = vmul.f32 %v1454_v42, %v1443_v59  ;;  %v1449_v49 = vpop.permute.xlu0 %1448 }
 0x5f5   : > { %v1466_v25 = vmul.f32 %v1449_v49, %v1442_v10 }
 0x5f6   : > { %v1484_v28 = vsel %vm1471_vm6, %v1483_v14, %v1467_v43  ;;  %v1485_v1 = vrot.slane %v1467_v43, 4 }
 0x5f7   : > { %v1490_v29 = vperm.slane %v1484_v28, %v1477_v60  ;;  %v1472_v57 = vsel %vm1471_vm6, %v1470_v22, %v1466_v25  ;;  %v1473_v33 = vrot.slane %v1466_v25, 4 }
 0x5f8   : > { %v1486_v61 = vsel %vm1471_vm6, %v1469_v4, %v1485_v1  ;;  %v1478_v47 = vperm.slane %v1472_v57, %v1477_v60 }
 0x5f9   : > { %v1494_v34 = vperm.slane %v1486_v61, %v1477_v60  ;;  %v1495_v36 = vrot.slane %v1490_v29, 4  ;;  %v1474_v62 = vsel %vm1471_vm6, %v1468_v38, %v1473_v33 }
 0x5fa   : > { %v1482_v7 = vperm.slane %v1474_v62, %v1477_v60  ;;  %v1497_v37 = vrot.slane %v1478_v47, 4 }
 0x5fb   : > { %v1507_v21 = vrot.slane %v1494_v34, 4  ;;  %v1496_v63 = vsel %vm1471_vm6, %v1495_v36, %v1478_v47 }
 0x5fc   : > { %v1498_v58 = vsel %vm1471_vm6, %v1490_v29, %v1497_v37  ;;  %v1502_v40 = vperm.slane %v1496_v63, %v1501_v53  ;;  %v1509_v27 = vrot.slane %v1482_v7, 4 }
 0x5fd   : > { %v1506_v0 = vperm.slane %v1498_v58, %v1501_v53  ;;  %v1508_v41 = vsel %vm1471_vm6, %v1507_v21, %v1482_v7 }
 0x5fe   : > { %v1510_v3 = vsel %vm1471_vm6, %v1494_v34, %v1509_v27  ;;  %v1514_v6 = vperm.slane %v1508_v41, %v1501_v53  ;;  %v1519_v9 = vrot.slane %v1502_v40, 4 }
 0x5ff   : > { %v1518_v12 = vperm.slane %v1510_v3, %v1501_v53  ;;  %v1521_v16 = vrot.slane %v1506_v0, 4 }
 0x600   : > { %v1523_v46 = vrot.slane %v1514_v6, 4  ;;  %v1520_v32 = vsel %vm1471_vm6, 0.0, %v1519_v9 }
 0x601   : > { %v1522_v13 = vsel %vm1471_vm6, 0.0, %v1521_v16  ;;  %v1525_v11 = vrot.slane %v1518_v12, 4  ;;  %v1527_v19 = vsel %vm1471_vm6, %v1521_v16, %v1502_v40 }
 0x602   : > { %v1532_v18 = vrot.slane %v1522_v13, 4  ;;  %v1531_v20 = vperm.slane %v1527_v19, %v1477_v60  ;;  %v1524_v31 = vsel %vm1471_vm6, 0.0, %v1523_v46 }
 0x603   : > { %v1526_v26 = vsel %vm1471_vm6, 0.0, %v1525_v11  ;;  %v1538_v39 = vsel %vm1471_vm6, %v1525_v11, %v1514_v6 }
 0x604   : > { %v1533_v23 = vsel %vm1471_vm6, %v1532_v18, %v1520_v32  ;;  %v1542_v15 = vperm.slane %v1538_v39, %v1477_v60  ;;  %v1543_v30 = vrot.slane %v1526_v26, 4  ;;  %v1551_v52 = vrot.slane %v1531_v20, 4 }
 0x605   : > { %v1537_v24 = vperm.slane %v1533_v23, %v1477_v60 }
 0x606   : > { %v1544_v5 = vsel %vm1471_vm6, %v1543_v30, %v1524_v31  ;;  %v1563_v44 = vrot.slane %v1542_v15, 4 }
 0x607   : > { %v1548_v45 = vperm.slane %v1544_v5, %v1477_v60  ;;  %v1552_v54 = vsel %vm1471_vm6, %v1537_v24, %v1551_v52  ;;  %v1549_v51 = vrot.slane %v1537_v24, 4 }
 0x608   : > { %v1560_v35 = vperm.slane %v1552_v54, %v1501_v53 }
 0x609   : > { %v1564_v2 = vsel %vm1471_vm6, %v1548_v45, %v1563_v44  ;;  %v1550_v50 = vsel %vm1471_vm6, %v1549_v51, %v1531_v20  ;;  %v1561_v55 = vrot.slane %v1548_v45, 4 }
 0x60a   : > { %v1572_v8 = vperm.slane %v1564_v2, %v1501_v53  ;;  %v1579_v56 = vrot.slane %v1560_v35, 4  ;;  %v1556_v4 = vperm.slane %v1550_v50, %v1501_v53 }
 0x60b   : > { %v1562_v38 = vsel %vm1471_vm6, %v1561_v55, %v1542_v15 }
 0x60c   : > { %v1580_v59 = vsel %vm1471_vm6, %v1572_v8, %v1579_v56  ;;  %v1568_v10 = vperm.slane %v1562_v38, %v1501_v53  ;;  %v1575_v42 = vrot.slane %v1556_v4, 4  ;;  %v1577_v17 = vrot.slane %v1572_v8, 4 }
 0x60d   : > { %1590 = vrot.lane.b32.xlu0 %v1580_v59, %s2014_s15 }
 0x60e   : > { %v1576_v60 = vsel %vm1471_vm6, %v1568_v10, %v1575_v42  ;;  %v1573_v14 = vrot.slane %v1568_v10, 4  ;;  %v1578_v48 = vsel %vm1471_vm6, %v1577_v17, %v1560_v35 }
 0x60f   : > { %1582 = vrot.lane.b32.xlu2 %v1576_v60, %s2015_s20 }
 0x610   : > { %v1574_v43 = vsel %vm1471_vm6, %v1573_v14, %v1556_v4 }
 0x617   : > { %1586 = vrot.lane.b32.xlu2 %v1578_v48, %s2016_s24 }
 0x669   : > { %v1583_v49 = vpop.permute.xlu2 %1582 }
 0x66a   : > { %v1593_v25 = vsel %vm658_vm2, %v1574_v43, %v1583_v49 }
 0x671   : > { %v1587_v22 = vpop.permute.xlu2 %1586 }
 0x672   : > { %v1595_v28 = vsel %vm1594_vm7, %v1593_v25, %v1587_v22 }
 0x67f   : > { %v1591_v1 = vpop.permute.xlu0 %1590 }
 0x680   : > { %v1597_v29 = vsel %vm1596_vm8, %v1595_v28, %v1591_v1 }
 0x681   : > { %v1598_v57 = vpack.c.bf16 %v1597_v29, %v1597_v29 }
 0x683   : > { %1600 = vst.msk [vmem:[%s247_s8] sm:$0xf] %vm1599_vm9, %v1598_v57 }
 0x684 PF: > { %s1765_s25 = sshll.u32 %s1989_s17, 1  ;;  %s1616_s7 = sshll.u32 %s247_s8, 4  ;;  %s1617_s7 = int_to_ptr.vmem [resolvable:$true] %s1616_s7 }
 0x685   : > { %s1612_s26 = sadd.s32 %s1985_s16, %s1765_s25  ;;  %s2659_s4 = sand.u32 1, %s1973_s13  }
 0x686   : > { %s1766_s11 = sshll.u32 %s1612_s26, 2  ;;  %s1602_s5 = scalar_lea.sflag [#allocation6], %s2659_s4 }
 0x687   : > { %s1614_s29 = scalar_lea.hbm %s2644_s3, %s1766_s11  ;;  %s1915_s9 = scalar_lea.hbm %s2644_s3, 16 }
 0x688   : > { %s1618_s30 = sshll.u32 %s1614_s29, 4  ;;  %s1619_s30 = int_to_ptr.hbm [resolvable:$true] %s1618_s30 }
 0x689   : > { %s1909_s10 = sshra.s32 %s1619_s30, 4  ;;  %s1910_s10 = int_to_ptr.hbm [resolvable:$true] %s1909_s10 }
 0x68a   : > { %s1911_s18 = scalar_lea.hbm %s1910_s10, 4  ;;  %p1916_p9 = scmp.lt.s32.totalorder %s1910_s10, %s2644_s3 }
 0x68b   : > { %p1912_p4 = scmp.ne.s32.totalorder %s1910_s10, %s1911_s18  ;;  %p1917_p10 = scmp.lt.s32.totalorder %s1915_s9, %s1911_s18 }
 0x68d   : > { %p1913_p5 = pnand %p1912_p4, %p2099_p6  ;;  %p1918_p11 = por %p1917_p10, %p1916_p9 }
 0x68f   : > { %p1914_p8 = pneg %p1913_p5 }
 0x691   : > { %p1919_p12 = pnand %p1918_p11, %p1914_p8 }
 0x693   : > { %1922 = shalt.err (!%p1919_p12)
}
 0x694   : > { %1769 = dma.vmem_to_hbm [thread:$0]  (%p2099_p6), %s1617_s7, 64, %s1619_s30, %s1602_s5  }
 0x695 PF: > { %p1775_p13 = scmp.ge.s32.totalorder %s2005_s21, 2  ;;  %s1630_s15 = sand.u32 1, %s1969_s12  }
 0x696   : > { %s1631_s20 = scalar_lea.sflag [#allocation6], %s1630_s15 }
 0x697   : > { %p1772_p0 = pnand %p1775_p13, %p2106_p7 }
 0x699   : > { %p1773_p1 = pneg %p1772_p0 }
 0x69b   : > { %1964 = dma.done.wait (%p1773_p1), %s1631_s20, 64  }
 0x69c   : > { %1966 = vsyncadd (%p1773_p1), %s1631_s20, 4294967232  ;;  %s16_s21 = sadd.s32 1, %s2005_s21   ;;  %s2660_s15 = sld [smem:[#allocation8_spill]] }
 0x69d   : > { %p13_p2 = scmp.ge.s32.totalorder %s16_s21, 10   ;;  %s2661_s16 = sld [smem:[#allocation9_spill]] }
 0x69e   : > { %s2662_s17 = sld [smem:[#allocation10_spill]]  ;;  %s2666_s12 = smov %s1973_s13 }
 0x69f   : > { %s2663_s18 = sld [smem:[#allocation11_spill]]  ;;  %s2667_s13 = smov %s1977_s14 }
 0x6a0   : > { %s2664_s19 = sld [smem:[#allocation12_spill]]  ;;  %s2668_s14 = smov %s2120_s6 }
 0x6a1   : > { %s2665_s20 = sld [smem:[#allocation13_spill]]  ;;  %15 = sbr.rel (!%p13_p2) target bundleno = 6 (0x6), region = 113 }
 0x6a6   :  { %1637 = vsyncpa [#allocation6], 1 }
 0x6a7   :  { %1639 = vsyncpa [#allocation6 + $0x1], 1 }

</bundles_post_ra>
